<compile_context>
chip_gen: v7x
topology: tpu7x:2x2x1
jax: 0.10.0
libtpu: 0.0.40
codegen_flags: <defaults>
</compile_context>

<pallas_src>
import math

import jax
import jax.numpy as jnp
from jax.experimental import pallas as pl
from jax.experimental.pallas import tpu as pltpu


def _compiler_params(vmem_estimate_bytes):
    # At least the default scoped limit, but stay under v7x's 64 MiB VMEM.
    limit = int(min(max(vmem_estimate_bytes, 32 << 20), 48 << 20))
    return pltpu.CompilerParams(
        dimension_semantics=("parallel",),
        vmem_limit_bytes=limit,
    )


# --------------------------------------------------------------------------
# Kernel 1: support = NodeNorm(x @ W_gc)   (fused mm + row-norm + weight_norm)
# --------------------------------------------------------------------------
def gcn_support_kernel(x_ref, wgc_ref, wnn_ref, bnn_ref, s_ref):
    # support = x @ W_gc  (MXU, f32 accumulation; operands in the weight dtype)
    x = x_ref[...].astype(wgc_ref.dtype)
    s = jnp.dot(x, wgc_ref[...], preferred_element_type=jnp.float32)  # (tm, Dgc) f32

    # NodeNormalization — faithful to the PyTorch formula (1e-10 added to the
    # diff *before* squaring, and again to std). Kept two-pass on purpose:
    # single-pass moments would change the numerics of this quirk.
    mean = jnp.mean(s, axis=1, keepdims=True)
    diff = s - mean
    var = jnp.mean((diff + 1e-10) * (diff + 1e-10), axis=1, keepdims=True)
    std = jnp.sqrt(var + 1e-10)
    xn = diff / (std + 1e-10)

    # weight_norm(Linear): y = xn @ W_eff.T + b   (W_eff passed pre-transposed)
    y = jnp.dot(xn.astype(wnn_ref.dtype), wnn_ref[...],
                preferred_element_type=jnp.float32)
    y = y + bnn_ref[...].astype(jnp.float32)
    s_ref[...] = y.astype(s_ref.dtype)


def gcn_support(x, w_gc, w_nn_t, b_nn, *, tm=256):
    """support = NodeNorm(x @ w_gc).

    x: (N, Din); w_gc: (Din, Dgc); w_nn_t: (Dgc, Dout) (effective weight_norm
    weight, pre-transposed); b_nn: (Dout,).
    """
    N, Din = x.shape
    Dgc = w_gc.shape[1]
    Dout = w_nn_t.shape[1]
    b2 = b_nn.reshape(1, Dout)
    grid = (pl.cdiv(N, tm),)  # ragged last tile handled by Pallas masking

    est = (2 * tm * Din * x.dtype.itemsize            # double-buffered x tile
           + 2 * tm * Dout * x.dtype.itemsize         # double-buffered out tile
           + 2 * (Din * Dgc * w_gc.dtype.itemsize     # resident weights (x2 buf)
                  + Dgc * Dout * w_nn_t.dtype.itemsize
                  + Dout * b2.dtype.itemsize)
           + (4 << 20))

    return pl.pallas_call(
        gcn_support_kernel,
        out_shape=jax.ShapeDtypeStruct((N, Dout), x.dtype),
        grid_spec=pltpu.PrefetchScalarGridSpec(
            num_scalar_prefetch=0,
            grid=grid,
            in_specs=[
                pl.BlockSpec((tm, Din), lambda i: (i, 0)),
                pl.BlockSpec((Din, Dgc), lambda i: (0, 0)),
                pl.BlockSpec((Dgc, Dout), lambda i: (0, 0)),
                pl.BlockSpec((1, Dout), lambda i: (0, 0)),
            ],
            out_specs=pl.BlockSpec((tm, Dout), lambda i: (i, 0)),
        ),
        compiler_params=_compiler_params(est),
    )(x, w_gc, w_nn_t, b2)


# --------------------------------------------------------------------------
# Kernel 2: out = adj @ support + bias     (torch.spmm, densified)
# --------------------------------------------------------------------------
def gcn_aggregate_kernel(adj_ref, s_ref, bgc_ref, o_ref):
    a = adj_ref[...].astype(s_ref.dtype)
    out = jnp.dot(a, s_ref[...], preferred_element_type=jnp.float32)
    o_ref[...] = (out + bgc_ref[...].astype(jnp.float32)).astype(o_ref.dtype)


def gcn_aggregate(adj, support, b_gc, *, tm=256):
    """out = adj @ support + b_gc; adj: (N, K), support: (K, Dout)."""
    N, K = adj.shape
    Dout = support.shape[1]
    b2 = b_gc.reshape(1, Dout)
    grid = (pl.cdiv(N, tm),)  # full-K blocks: no K-padding contamination

    est = (2 * tm * K * adj.dtype.itemsize
           + 2 * K * Dout * support.dtype.itemsize
           + 2 * tm * Dout * support.dtype.itemsize
           + 2 * Dout * b2.dtype.itemsize
           + (4 << 20))

    return pl.pallas_call(
        gcn_aggregate_kernel,
        out_shape=jax.ShapeDtypeStruct((N, Dout), support.dtype),
        grid_spec=pltpu.PrefetchScalarGridSpec(
            num_scalar_prefetch=0,
            grid=grid,
            in_specs=[
                pl.BlockSpec((tm, K), lambda i: (i, 0)),
                pl.BlockSpec((K, Dout), lambda i: (0, 0)),
                pl.BlockSpec((1, Dout), lambda i: (0, 0)),
            ],
            out_specs=pl.BlockSpec((tm, Dout), lambda i: (i, 0)),
        ),
        compiler_params=_compiler_params(est),
    )(adj, support, b2)


# --------------------------------------------------------------------------
# Full GraphConvolution forward
# --------------------------------------------------------------------------
def graph_convolution(x, adj, w_gc, w_nn_eff, b_nn, b_gc, *, tm=256):
    # support = nn_func(x @ W_gc)
    support = gcn_support(x, w_gc, jnp.transpose(w_nn_eff), b_nn, tm=tm)
    # F.relu(support) in the PyTorch forward is dead code (its result is
    # overwritten by torch.spmm), so it is intentionally omitted.
    # TODO(synk): torch.spmm takes a sparse adjacency; implemented here as a
    # dense tiled matmul (no sparse spmm primitive in Pallas TPU).
    return gcn_aggregate(adj, support, b_gc, tm=tm)


# --------------------------------------------------------------------------
# Parameter glue (plain JAX — not on the hot path)
# --------------------------------------------------------------------------
def make_gc_params(key, in_features, out_features):
    """GraphConvolution weight/bias: uniform(-stdv, stdv), stdv = 1/sqrt(out)."""
    kw, kb = jax.random.split(key)
    stdv = 1.0 / math.sqrt(out_features)
    w = jax.random.uniform(kw, (in_features, out_features), jnp.float32, -stdv, stdv)
    b = jax.random.uniform(kb, (out_features,), jnp.float32, -stdv, stdv)
    return w, b


def make_nn_params(key, in_size, out_size):
    """weight_norm(Linear(in_size, out_size)) effective weight + bias."""
    kv, kb = jax.random.split(key)
    bound = 1.0 / math.sqrt(in_size)
    v = jax.random.uniform(kv, (out_size, in_size), jnp.float32, -bound, bound)
    bias = jax.random.uniform(kb, (out_size,), jnp.float32, -bound, bound)
    v_norm = jnp.sqrt(jnp.sum(v * v, axis=1, keepdims=True))  # (out_size, 1)
    g = v_norm                       # weight_norm init: g = ||v||_row
    w_eff = g * v / v_norm           # (out_size, in_size)
    return w_eff, bias


def reference(x, adj, w_gc, w_nn_eff, b_nn, b_gc):
    support = x @ w_gc
    mean = jnp.mean(support, axis=1, keepdims=True)
    diff = support - mean
    var = jnp.mean((diff + 1e-10) ** 2, axis=1, keepdims=True)
    std = jnp.sqrt(var + 1e-10)
    xn = diff / (std + 1e-10)
    support = xn @ w_nn_eff.T + b_nn
    return adj @ support + b_gc


if __name__ == "__main__":
    key = jax.random.PRNGKey(0)
    kx, ka, kgc, knn = jax.random.split(key, 4)

    # nodes x in_features; out_features = 128 keeps the output lane-dense.
    N, in_features, out_features = 512, 128, 128
    x = jax.random.normal(kx, (N, in_features), jnp.float32)

    # Dense row-normalized adjacency with self-loops (pygcn's normalized adj).
    a = (jax.random.uniform(ka, (N, N)) < 0.05).astype(jnp.float32)
    adj = a + jnp.eye(N, dtype=jnp.float32)
    adj = adj / jnp.sum(adj, axis=1, keepdims=True)

    w_gc, b_gc = make_gc_params(kgc, in_features, out_features)
    w_nn_eff, b_nn = make_nn_params(knn, out_features, out_features)

    # tm=256 -> grid = 2 steps (keeps both v7x TensorCores busy at this demo N).
    # For large N, sweep tm upward (512..2048) within the VMEM budget.
    out = graph_convolution(x, adj, w_gc, w_nn_eff, b_nn, b_gc, tm=256)
    out = jax.block_until_ready(out)

    ref = reference(x, adj, w_gc, w_nn_eff, b_nn, b_gc)
    assert out.shape == (N, out_features)
    err = float(jnp.max(jnp.abs(out - ref)))
    assert jnp.allclose(out, ref, atol=2e-3, rtol=2e-3), f"mismatch vs reference: {err}"
    print("KERNEL_OK")
</pallas_src>

<mosaic_0001>
module attributes {stable_mosaic.version = 11 : i64} {
  func.func @gcn_support_kernel(%arg0: i32, %arg1: memref<256x128xf32, #tpu.memory_space<vmem>>, %arg2: memref<128x128xf32, #tpu.memory_space<vmem>>, %arg3: memref<128x128xf32, #tpu.memory_space<vmem>>, %arg4: memref<1x128xf32, #tpu.memory_space<vmem>>, %arg5: memref<256x128xf32, #tpu.memory_space<vmem>>) attributes {dimension_semantics = [#tpu.dimension_semantics<parallel>], iteration_bounds = array<i64: 2>, scalar_prefetch = 0 : i64, scratch_operands = 0 : i64, tpu.core_type = #tpu.core_type<tc>, window_params = [{transform_indices = @transform_0, window_bounds = array<i64: 256, 128>}, {pipeline_mode = #tpu.pipeline_mode<synchronous>, transform_indices = @transform_1, window_bounds = array<i64: 128, 128>}, {pipeline_mode = #tpu.pipeline_mode<synchronous>, transform_indices = @transform_2, window_bounds = array<i64: 128, 128>}, {pipeline_mode = #tpu.pipeline_mode<synchronous>, transform_indices = @transform_3, window_bounds = array<i64: 1, 128>}, {transform_indices = @transform_4, window_bounds = array<i64: 256, 128>}]} {
    %c0 = arith.constant 0 : index
    %c0_0 = arith.constant 0 : index
    %0 = vector.load %arg1[%c0, %c0_0] : memref<256x128xf32, #tpu.memory_space<vmem>>, vector<256x128xf32>
    %c0_1 = arith.constant 0 : index
    %c0_2 = arith.constant 0 : index
    %1 = vector.load %arg2[%c0_1, %c0_2] : memref<128x128xf32, #tpu.memory_space<vmem>>, vector<128x128xf32>
    %cst = arith.constant dense<0.000000e+00> : vector<256x128xf32>
    %2 = tpu.matmul %0, %1, %cst {dimension_numbers = #tpu.dot_dimension_numbers<[1], [0], [0], [1], [0, 0, 1, 1], [], []>} : vector<256x128xf32>, vector<128x128xf32>, vector<256x128xf32> -> vector<256x128xf32>
    %cst_3 = arith.constant dense<0.000000e+00> : vector<256xf32>
    %3 = vector.multi_reduction <add>, %2, %cst_3 [1] : vector<256x128xf32> to vector<256xf32>
    %4 = vector.shape_cast %3 : vector<256xf32> to vector<256x1xf32>
    %cst_4 = arith.constant 1.280000e+02 : f32
    %5 = vector.broadcast %cst_4 : f32 to vector<256x1xf32>
    %6 = arith.divf %4, %5 : vector<256x1xf32>
    %7 = vector.broadcast %6 : vector<256x1xf32> to vector<256x128xf32>
    %8 = arith.subf %2, %7 : vector<256x128xf32>
    %cst_5 = arith.constant 1.000000e-10 : f32
    %9 = vector.broadcast %cst_5 : f32 to vector<256x128xf32>
    %10 = arith.addf %8, %9 : vector<256x128xf32>
    %cst_6 = arith.constant 1.000000e-10 : f32
    %11 = vector.broadcast %cst_6 : f32 to vector<256x128xf32>
    %12 = arith.addf %8, %11 : vector<256x128xf32>
    %13 = arith.mulf %10, %12 : vector<256x128xf32>
    %cst_7 = arith.constant dense<0.000000e+00> : vector<256xf32>
    %14 = vector.multi_reduction <add>, %13, %cst_7 [1] : vector<256x128xf32> to vector<256xf32>
    %15 = vector.shape_cast %14 : vector<256xf32> to vector<256x1xf32>
    %cst_8 = arith.constant 1.280000e+02 : f32
    %16 = vector.broadcast %cst_8 : f32 to vector<256x1xf32>
    %17 = arith.divf %15, %16 : vector<256x1xf32>
    %cst_9 = arith.constant 1.000000e-10 : f32
    %18 = vector.broadcast %cst_9 : f32 to vector<256x1xf32>
    %19 = arith.addf %17, %18 : vector<256x1xf32>
    %20 = math.sqrt %19 : vector<256x1xf32>
    %cst_10 = arith.constant 1.000000e-10 : f32
    %21 = vector.broadcast %cst_10 : f32 to vector<256x1xf32>
    %22 = arith.addf %20, %21 : vector<256x1xf32>
    %23 = vector.broadcast %22 : vector<256x1xf32> to vector<256x128xf32>
    %24 = arith.divf %8, %23 : vector<256x128xf32>
    %c0_11 = arith.constant 0 : index
    %c0_12 = arith.constant 0 : index
    %25 = vector.load %arg3[%c0_11, %c0_12] : memref<128x128xf32, #tpu.memory_space<vmem>>, vector<128x128xf32>
    %cst_13 = arith.constant dense<0.000000e+00> : vector<256x128xf32>
    %26 = tpu.matmul %24, %25, %cst_13 {dimension_numbers = #tpu.dot_dimension_numbers<[1], [0], [0], [1], [0, 0, 1, 1], [], []>} : vector<256x128xf32>, vector<128x128xf32>, vector<256x128xf32> -> vector<256x128xf32>
    %c0_14 = arith.constant 0 : index
    %c0_15 = arith.constant 0 : index
    %27 = vector.load %arg4[%c0_14, %c0_15] : memref<1x128xf32, #tpu.memory_space<vmem>>, vector<1x128xf32>
    %28 = vector.broadcast %27 : vector<1x128xf32> to vector<256x128xf32>
    %29 = arith.addf %26, %28 : vector<256x128xf32>
    %c0_16 = arith.constant 0 : index
    %c0_17 = arith.constant 0 : index
    %30 = vector.load %arg5[%c0_16, %c0_17] : memref<256x128xf32, #tpu.memory_space<vmem>>, vector<256x128xf32>
    tpu.vector_store %arg5[%c0_16, %c0_17], %29 {strides = array<i32>} : memref<256x128xf32, #tpu.memory_space<vmem>>, vector<256x128xf32>,
    return
  }
  func.func @transform_0(%arg0: i32) -> (i32, i32) {
    %c0_i32 = arith.constant 0 : i32
    %c0_i32_0 = arith.constant 0 : i32
    return %arg0, %c0_i32 : i32, i32
  }
  func.func @transform_1(%arg0: i32) -> (i32, i32) {
    %c0_i32 = arith.constant 0 : i32
    %c0_i32_0 = arith.constant 0 : i32
    %c0_i32_1 = arith.constant 0 : i32
    return %c0_i32, %c0_i32_0 : i32, i32
  }
  func.func @transform_2(%arg0: i32) -> (i32, i32) {
    %c0_i32 = arith.constant 0 : i32
    %c0_i32_0 = arith.constant 0 : i32
    %c0_i32_1 = arith.constant 0 : i32
    return %c0_i32, %c0_i32_0 : i32, i32
  }
  func.func @transform_3(%arg0: i32) -> (i32, i32) {
    %c0_i32 = arith.constant 0 : i32
    %c0_i32_0 = arith.constant 0 : i32
    %c0_i32_1 = arith.constant 0 : i32
    return %c0_i32, %c0_i32_0 : i32, i32
  }
  func.func @transform_4(%arg0: i32) -> (i32, i32) {
    %c0_i32 = arith.constant 0 : i32
    %c0_i32_0 = arith.constant 0 : i32
    return %arg0, %c0_i32 : i32, i32
  }
}

</mosaic_0001>

<bundles_post_ra>
// kernel: tpu_custom_call.1
= control target key start
LH: loop header
LB: loop body
LE: loop exit
PB: predicated region body
PF: predicated region fallthrough
CT: control target
= control target key end

     0   :  { %9 = vsyncpa [#allocation3], 0  ;;  %s3299_s0 = inlined_call_operand.hbm [shape: f32[512,128], index: 0, kind: input, shape index: {}]   ;;  %s3300_s1 = inlined_call_operand.hbm [shape: f32[128,128], index: 1, kind: input, shape index: {}]   ;;  %s3301_s2 = inlined_call_operand.hbm [shape: f32[128,128], index: 2, kind: input, shape index: {}]   ;;  %s3302_s3 = inlined_call_operand.vmem [shape: f32[1,128], index: 3, kind: input, shape index: {}]   ;;  %s3303_s4 = inlined_call_operand.hbm [shape: f32[512,128], index: 4, kind: output, shape index: {}]  }
   0x1   :  { %11 = vsyncpa [#allocation3 + $0x1], 0 }
   0x2   :  { %12 = vsyncpa [#allocation6], 0 }
   0x3   :  { %13 = vsyncpa [#allocation4], 0 }
   0x4   :  { %15 = vsyncpa [#allocation4 + $0x1], 0  ;;  %s2278_s15 = smov 0   ;;  %s2280_s16 = smov 0  }
   0x5   :  { %s2282_s17 = smov 0   ;;  %s2284_s18 = smov 0  }
   0x6 LB: > { %s2299_s19 = sadd.s32 4294967295, %s2243_s18   ;;  %s1547_s20 = sadd.s32 4294967294, %s2243_s18   ;;  %s2243_s18 = sphi %s2284_s18, %s3363_s18   ;;  %s2239_s17 = sphi %s2282_s17, %s3362_s17   ;;  %s2235_s16 = sphi %s2280_s16, %s3361_s16   ;;  %s2231_s15 = sphi %s2278_s15, %s3360_s15  }
   0x7   : > { %p41_p0 = scmp.ne.s32.totalorder %s2235_s16, %s2231_s15  ;;  %p3304_p1 = scmp.eq.s32.totalorder %s2299_s19, 0 }
   0x8   : > { %p134_p3 = scmp.eq.s32.totalorder %s1547_s20, 1  ;;  %p1548_p5 = scmp.ge.s32.totalorder %s2243_s18, 1 }
   0x9   : > { %p2308_p4 = por %p3304_p1, %p41_p0  ;;  %p141_p7 = scmp.lt.s32.totalorder %s2243_s18, 3 }
   0xa   : > { %p2313_p6 = por %p134_p3, %p41_p0  ;;  %s2245_s24 = smov [#allocation5]  }
   0xb   : > { %s3314_s21 = scalar_select %p2308_p4, 1, 0 }
   0xc   : > { %s3315_s22 = scalar_select %p2313_p6, 1, 0 }
   0xd   : > { %p2318_p8 = pnand %p1548_p5, %p141_p7  ;;  %s153_s25 = sshll.u32 %s2245_s24, 4  ;;  %s2322_s25 = int_to_ptr.vmem [resolvable:$true] %s153_s25 }
   0xe   : > { %s2246_s27 = smov [#allocation7]   ;;  %s2087_s5 = scalar_lea.hbm %s3300_s1, 2048 }
   0xf   : > { %p1900_p9 = pneg %p2318_p8  ;;  %s166_s28 = sshll.u32 %s2246_s27, 4  ;;  %s2333_s28 = int_to_ptr.vmem [resolvable:$true] %s166_s28 }
  0x10   : > { %p2088_p12 = scmp.ne.s32.totalorder %s3300_s1, %s2087_s5  ;;  %p2094_p5 = scmp.lt.u32.totalorder %s2087_s5, %s3300_s1 }
  0x11   : > { %p2329_p11 = pnand %p1900_p9, %p3304_p1 }
  0x13   : > { %p2089_p13 = pneg %p2329_p11 }
  0x15   : > { %p2090_p0 = pnand %p2089_p13, %p2088_p12 }
  0x17   : > { %p2091_p3 = pneg %p2090_p0 }
  0x19   : > { %p2096_p7 = pnand %p2094_p5, %p2091_p3 }
  0x1b   : > { %2099 = shalt.err (!%p2096_p7)
}
  0x1c   : > { %s2100_s10 = scalar_lea.vmem %s2322_s25, 2048  ;;  %p2108_p2 = scmp.lt.s32.totalorder %s2322_s25, %s2322_s25 }
  0x1d   : > { %p2101_p9 = scmp.ne.s32.totalorder %s2322_s25, %s2100_s10  ;;  %p2109_p12 = scmp.lt.s32.totalorder %s2100_s10, %s2100_s10 }
  0x1f   : > { %p2103_p10 = pnand %p2101_p9, %p2089_p13  ;;  %p2110_p0 = por %p2109_p12, %p2108_p2 }
  0x21   : > { %p2104_p1 = pneg %p2103_p10 }
  0x23   : > { %p2111_p6 = pnand %p2110_p0, %p2104_p1 }
  0x25   : > { %2114 = shalt.err (!%p2111_p6)
}
  0x26   : > { %s2247_s11 = smov 128   ;;  %s2248_s12 = smov 8  }
  0x27   : > { %1903 = dma.hbm_to_vmem [thread:$0]  (!%p2329_p11), %s3300_s1, 2048, %s2322_s25, [#allocation6], %s2247_s11, %s2247_s11, %s2248_s12  }
  0x28   : > { %s2115_s27 = scalar_lea.hbm %s3301_s2, 2048 }
  0x29   : > { %p2116_p1 = scmp.ne.s32.totalorder %s3301_s2, %s2115_s27  ;;  %p2122_p10 = scmp.lt.u32.totalorder %s2115_s27, %s3301_s2 }
  0x2b   : > { %p2118_p2 = pnand %p2116_p1, %p2089_p13 }
  0x2d   : > { %p2119_p6 = pneg %p2118_p2 }
  0x2f   : > { %p2124_p3 = pnand %p2122_p10, %p2119_p6 }
  0x31   : > { %2127 = shalt.err (!%p2124_p3)
}
  0x32   : > { %s2128_s25 = scalar_lea.vmem %s2333_s28, 2048  ;;  %p2136_p12 = scmp.lt.s32.totalorder %s2333_s28, %s2333_s28 }
  0x33   : > { %p2129_p5 = scmp.ne.s32.totalorder %s2333_s28, %s2128_s25  ;;  %p2137_p0 = scmp.lt.s32.totalorder %s2128_s25, %s2128_s25 }
  0x35   : > { %p2131_p7 = pnand %p2129_p5, %p2089_p13  ;;  %p2138_p1 = por %p2137_p0, %p2136_p12 }
  0x37   : > { %p2132_p9 = pneg %p2131_p7 }
  0x39   : > { %p2139_p2 = pnand %p2138_p1, %p2132_p9 }
  0x3b   : > { %2142 = shalt.err (!%p2139_p2)
}
  0x3c   : > { %1906 = dma.hbm_to_vmem [thread:$0]  (!%p2329_p11), %s3301_s2, 2048, %s2333_s28, [#allocation6], %s2247_s11, %s2247_s11, %s2248_s12  }
  0x3d   : > { %s2394_s26 = sadd.s32 1, %s2243_s18   ;;  %s28_s9 = sadd.s32 1, %s2239_s17 }
  0x3e   : > { %s25_s10 = ssub.s32 %s2243_s18, %s2394_s26  ;;  %p35_p13 = scmp.ne.s32.totalorder %s2239_s17, %s2235_s16 }
  0x3f   : > { %p26_p6 = scmp.eq.s32.totalorder %s25_s10, 0  ;;  %p36_p10 = scmp.eq.s32.totalorder %s2243_s18, 0 }
  0x40   : > { %p3318_p3 = scmp.eq.s32.totalorder %s2299_s19, 1  ;;  %p1917_p7 = scmp.lt.s32.totalorder %s2243_s18, 2 }
  0x41   : > { %s2410_s14 = scalar_select %p26_p6, %s2239_s17, %s28_s9  }
  0x42   : > { %p2404_p5 = por %p3318_p3, %p35_p13  ;;  %p37_p9 = por %p36_p10, %p35_p13 }
  0x43   : > { %s183_s20 = sand.u32 1, %s2239_s17   ;;  %s1566_s28 = sshll.u32 %s2243_s18, 12 }
  0x44   : > { %s3319_s13 = scalar_select %p2404_p5, 1, 0 }
  0x45   : > { %s1552_s24 = sshll.u32 %s183_s20, 8  ;;  %s2417_s30 = scalar_lea.hbm %s3299_s0, %s1566_s28 }
  0x46   : > { %s187_s5 = scalar_lea.vmem [#allocation2], %s1552_s24  ;;  %p2421_p11 = pnand %p1917_p7, %p37_p9 }
  0x47   : > { %s194_s6 = sshll.u32 %s187_s5, 4  ;;  %s2425_s7 = scalar_lea.sflag [#allocation3], %s183_s20  ;;  %s2419_s6 = int_to_ptr.vmem [resolvable:$true] %s194_s6 }
  0x48   : > { %s2143_s8 = scalar_lea.hbm %s2417_s30, 4096  ;;  %p2145_p0 = pneg %p2421_p11 }
  0x49   : > { %p2144_p12 = scmp.ne.s32.totalorder %s2417_s30, %s2143_s8  ;;  %s2148_s24 = scalar_lea.hbm %s3299_s0, 8192 }
  0x4a   : > { %p2149_p13 = scmp.lt.u32.totalorder %s2417_s30, %s3299_s0  ;;  %p2150_p6 = scmp.lt.u32.totalorder %s2148_s24, %s2143_s8 }
  0x4b   : > { %p2146_p1 = pnand %p2145_p0, %p2144_p12  ;;  %p2152_p3 = scmp.lt.u32.totalorder %s2143_s8, %s2417_s30 }
  0x4c   : > { %p2151_p10 = por %p2150_p6, %p2149_p13 }
  0x4d   : > { %p2147_p2 = pneg %p2146_p1 }
  0x4e   : > { %p2153_p7 = por %p2152_p3, %p2151_p10 }
  0x50   : > { %p2154_p9 = pnand %p2153_p7, %p2147_p2 }
  0x52   : > { %2157 = shalt.err (!%p2154_p9)
}
  0x53   : > { %s2158_s20 = scalar_lea.vmem %s2419_s6, 4096  ;;  %s2249_s29 = smov [#allocation2]  }
  0x54   : > { %p2159_p12 = scmp.ne.s32.totalorder %s2419_s6, %s2158_s20  ;;  %s2163_s5 = sshll.u32 %s2249_s29, 4  ;;  %s2164_s5 = int_to_ptr.vmem [resolvable:$false] %s2163_s5 }
  0x55   : > { %s2165_s9 = scalar_lea.vmem %s2164_s5, 8192  ;;  %p2166_p4 = scmp.lt.s32.totalorder %s2419_s6, %s2164_s5 }
  0x56   : > { %p2161_p1 = pnand %p2159_p12, %p2145_p0  ;;  %p2167_p13 = scmp.lt.s32.totalorder %s2165_s9, %s2158_s20 }
  0x58   : > { %p2162_p5 = pneg %p2161_p1  ;;  %p2168_p6 = por %p2167_p13, %p2166_p4 }
  0x5a   : > { %p2169_p10 = pnand %p2168_p6, %p2162_p5 }
  0x5c   : > { %2172 = shalt.err (!%p2169_p10)
}
  0x5d   : > { %1910 = dma.hbm_to_vmem [thread:$0]  (!%p2421_p11), %s2417_s30, 4096, %s2419_s6, %s2425_s7, %s2247_s11, %s2247_s11, %s2248_s12  }
  0x5e   : > { %206 = sbr.rel (%p2318_p8) target bundleno = 1003 (0x3eb), region = 36 }
  0x65   : > { %s2459_s8 = sand.u32 1, %s2235_s16   ;;  %p3321_p4 = scmp.ne.s32.totalorder %s3314_s21, 0 }
  0x66   : > { %s1556_s10 = sshll.u32 %s2459_s8, 8  ;;  %s209_s24 = scalar_lea.sflag [#allocation3], %s2459_s8 }
  0x67   : > { %s2465_s25 = scalar_lea.vmem [#allocation2], %s1556_s10 }
  0x68   : > { %2218 = dma.done.wait (%p3321_p4), %s209_s24, 4096  }
  0x69   : > { %2220 = vsyncadd (%p3321_p4), %s209_s24, 4294963200  ;;  %p3322_p5 = scmp.eq.s32.totalorder %s2299_s19, 0 }
  0x6b   : > { %2222 = dma.done.wait (%p3322_p5), [#allocation6], 4096   ;;  %p3323_p8 = pmov %p3322_p5 }
  0x6c   : > { %v279_v0 = vld [vmem:[#allocation5] sm:$0xff]  ;;  %v280_v1 = vld [vmem:[#allocation5 + $0x8] sm:$0xff]  ;;  %v281_v2 = vld [vmem:[#allocation5 + $0x10] sm:$0xff]  ;;  %s3184_s11 = scalar_lea.vmem [#allocation8], %s1556_s10  ;;  %s1567_s12 = sshll.u32 %s2299_s19, 12 }
  0x6d   : > { %2224 = vsyncadd (%p3323_p8), [#allocation6], 4294963200  ;;  %v1824_v3 = vpack.c.bf16 %v280_v1, %v279_v0  ;;  %v282_v4 = vld [vmem:[#allocation5 + $0x18] sm:$0xff]  ;;  %v283_v6 = vld [vmem:[#allocation5 + $0x20] sm:$0xff]  ;;  %s1455_s30 = sshll.u32 %s3184_s11, 4  ;;  %s3250_s28 = scalar_lea.hbm %s3303_s4, %s1567_s12  ;;  %s3252_s30 = int_to_ptr.vmem [resolvable:$true] %s1455_s30 }
  0x6e   : > { %v1828_v5 = vpack.c.bf16 %v282_v4, %v281_v2  ;;  %v284_v7 = vld [vmem:[#allocation5 + $0x28] sm:$0xff]  ;;  %v247_v9 = vld [vmem:[%s2465_s25] sm:$0xff]  ;;  %v285_v10 = vld [vmem:[#allocation5 + $0x30] sm:$0xff]  ;;  %s1442_s19 = scalar_lea.sflag [#allocation4], %s2459_s8  ;;  %s2173_s27 = scalar_lea.vmem %s3252_s30, 4096 }
  0x6f   : > { %1825 = vmatprep.subr.bf16.mxu0 %v1824_v3  ;;  %v1832_v8 = vpack.c.bf16 %v284_v7, %v283_v6  ;;  %v286_v11 = vld [vmem:[#allocation5 + $0x38] sm:$0xff]  ;;  %1696 = vmatprep.mubr.f32.mxu0 %v247_v9  ;;  %v287_v13 = vld [vmem:[#allocation5 + $0x40] sm:$0xff]  ;;  %v288_v14 = vld [vmem:[#allocation5 + $0x48] sm:$0xff]  ;;  %p2174_p11 = scmp.ne.s32.totalorder %s3252_s30, %s2173_s27  ;;  %p3357_p0 = scmp.ne.s32.totalorder %s3319_s13, 0 }
  0x70   : > { %1827 = vmatpush3.bf16.msra.mxu0 %v1824_v3  ;;  %v1836_v12 = vpack.c.bf16 %v286_v11, %v285_v10  ;;  %v1840_v15 = vpack.c.bf16 %v288_v14, %v287_v13  ;;  %v289_v16 = vld [vmem:[#allocation5 + $0x50] sm:$0xff]  ;;  %v290_v17 = vld [vmem:[#allocation5 + $0x58] sm:$0xff]  ;;  %v291_v19 = vld [vmem:[#allocation5 + $0x60] sm:$0xff]  ;;  %s2250_s20 = smov [#allocation8]  }
  0x71   : > { %1829 = vmatprep.subr.bf16.mxu0 %v1828_v5  ;;  %v1844_v18 = vpack.c.bf16 %v290_v17, %v289_v16  ;;  %v292_v20 = vld [vmem:[#allocation5 + $0x68] sm:$0xff]  ;;  %v293_v22 = vld [vmem:[#allocation5 + $0x70] sm:$0xff]  ;;  %v294_v23 = vld [vmem:[#allocation5 + $0x78] sm:$0xff]  ;;  %p2175_p2 = pnand %p2174_p11, %p3357_p0  ;;  %s2177_s29 = sshll.u32 %s2250_s20, 4  ;;  %s2178_s29 = int_to_ptr.vmem [resolvable:$false] %s2177_s29 }
  0x72   : > { %v1848_v21 = vpack.c.bf16 %v292_v20, %v291_v19  ;;  %v1852_v24 = vpack.c.bf16 %v294_v23, %v293_v22  ;;  %v248_v25 = vld [vmem:[%s2465_s25 + $0x8] sm:$0xff]  ;;  %v249_v26 = vld [vmem:[%s2465_s25 + $0x10] sm:$0xff]  ;;  %v250_v27 = vld [vmem:[%s2465_s25 + $0x18] sm:$0xff]  ;;  %s2179_s5 = scalar_lea.vmem %s2178_s29, 8192  ;;  %p2180_p7 = scmp.lt.s32.totalorder %s3252_s30, %s2178_s29 }
  0x73   : > { %v251_v28 = vld [vmem:[%s2465_s25 + $0x20] sm:$0xff]  ;;  %v252_v29 = vld [vmem:[%s2465_s25 + $0x28] sm:$0xff]  ;;  %v253_v30 = vld [vmem:[%s2465_s25 + $0x30] sm:$0xff]  ;;  %p2176_p3 = pneg %p2175_p2  ;;  %p2181_p9 = scmp.lt.s32.totalorder %s2179_s5, %s2173_s27 }
  0x74   : > { %1831 = vmatpush3.bf16.msra.mxu0 %v1828_v5  ;;  %v254_v31 = vld [vmem:[%s2465_s25 + $0x38] sm:$0xff]  ;;  %v255_v32 = vld [vmem:[%s2465_s25 + $0x40] sm:$0xff]  ;;  %v256_v33 = vld [vmem:[%s2465_s25 + $0x48] sm:$0xff] }
  0x75   : > { %1833 = vmatprep.subr.bf16.mxu0 %v1832_v8  ;;  %v257_v34 = vld [vmem:[%s2465_s25 + $0x50] sm:$0xff]  ;;  %v258_v35 = vld [vmem:[%s2465_s25 + $0x58] sm:$0xff]  ;;  %v259_v36 = vld [vmem:[%s2465_s25 + $0x60] sm:$0xff]  ;;  %p2182_p12 = por %p2181_p9, %p2180_p7 }
  0x76   : > { %v260_v37 = vld [vmem:[%s2465_s25 + $0x68] sm:$0xff]  ;;  %v261_v38 = vld [vmem:[%s2465_s25 + $0x70] sm:$0xff]  ;;  %v262_v39 = vld [vmem:[%s2465_s25 + $0x78] sm:$0xff] }
  0x77   : > { %v263_v40 = vld [vmem:[%s2465_s25 + $0x80] sm:$0xff]  ;;  %v264_v41 = vld [vmem:[%s2465_s25 + $0x88] sm:$0xff]  ;;  %v265_v42 = vld [vmem:[%s2465_s25 + $0x90] sm:$0xff]  ;;  %p2183_p1 = pnand %p2182_p12, %p2176_p3 }
  0x78   : > { %1835 = vmatpush3.bf16.msra.mxu0 %v1832_v8  ;;  %v266_v43 = vld [vmem:[%s2465_s25 + $0x98] sm:$0xff]  ;;  %v267_v44 = vld [vmem:[%s2465_s25 + $0xa0] sm:$0xff]  ;;  %v268_v45 = vld [vmem:[%s2465_s25 + $0xa8] sm:$0xff] }
  0x79   : > { %1837 = vmatprep.subr.bf16.mxu0 %v1836_v12  ;;  %v269_v46 = vld [vmem:[%s2465_s25 + $0xb0] sm:$0xff]  ;;  %v270_v47 = vld [vmem:[%s2465_s25 + $0xb8] sm:$0xff]  ;;  %v271_v48 = vld [vmem:[%s2465_s25 + $0xc0] sm:$0xff] }
  0x7a   : > { %v272_v49 = vld [vmem:[%s2465_s25 + $0xc8] sm:$0xff]  ;;  %v273_v50 = vld [vmem:[%s2465_s25 + $0xd0] sm:$0xff]  ;;  %v274_v51 = vld [vmem:[%s2465_s25 + $0xd8] sm:$0xff] }
  0x7b   : > { %v275_v52 = vld [vmem:[%s2465_s25 + $0xe0] sm:$0xff]  ;;  %v276_v53 = vld [vmem:[%s2465_s25 + $0xe8] sm:$0xff]  ;;  %v277_v54 = vld [vmem:[%s2465_s25 + $0xf0] sm:$0xff] }
  0x7c   : > { %1839 = vmatpush3.bf16.msra.mxu0 %v1836_v12  ;;  %v278_v55 = vld [vmem:[%s2465_s25 + $0xf8] sm:$0xff] }
  0x7d   : > { %1841 = vmatprep.subr.bf16.mxu0 %v1840_v15 }
  0x80   : > { %1843 = vmatpush3.bf16.msra.mxu0 %v1840_v15 }
  0x81   : > { %1845 = vmatprep.subr.bf16.mxu0 %v1844_v18 }
  0x84   : > { %1847 = vmatpush3.bf16.msra.mxu0 %v1844_v18 }
  0x85   : > { %1849 = vmatprep.subr.bf16.mxu0 %v1848_v21 }
  0x88   : > { %1851 = vmatpush3.bf16.msra.mxu0 %v1848_v21 }
  0x89   : > { %1853 = vmatprep.subr.bf16.mxu0 %v1852_v24 }
  0x8c   : > { %1855 = vmatpush3.bf16.msra.mxu0 %v1852_v24 }
  0x8f   : > { %1697 = vmatmul.mubr.f32.vlgmr.msra.gmra.mrb[0].mxu0 %v248_v25 }
  0x90   : > { %1699 = vmatprep.mubr.f32.mxu0 %v249_v26 }
  0x93   : > { %1700 = vmatmul.mubr.f32.gmra.mrb[2].mxu0 %v250_v27 }
  0x94   : > { %1702 = vmatprep.mubr.f32.mxu0 %v251_v28 }
  0x97   : > { %1703 = vmatmul.mubr.f32.gmra.mrb[4].mxu0 %v252_v29 }
  0x98   : > { %1705 = vmatprep.mubr.f32.mxu0 %v253_v30 }
  0x9b   : > { %1706 = vmatmul.mubr.f32.gmra.mrb[6].mxu0 %v254_v31 }
  0x9c   : > { %1708 = vmatprep.mubr.f32.mxu0 %v255_v32 }
  0x9f   : > { %1709 = vmatmul.mubr.f32.gmra.mrb[8].mxu0 %v256_v33 }
  0xa0   : > { %1711 = vmatprep.mubr.f32.mxu0 %v257_v34 }
  0xa3   : > { %1712 = vmatmul.mubr.f32.gmra.mrb[10].mxu0 %v258_v35 }
  0xa4   : > { %1714 = vmatprep.mubr.f32.mxu0 %v259_v36 }
  0xa7   : > { %1715 = vmatmul.mubr.f32.gmra.mrb[12].mxu0 %v260_v37 }
  0xa8   : > { %1717 = vmatprep.mubr.f32.mxu0 %v261_v38 }
  0xab   : > { %1718 = vmatmul.mubr.f32.gmra.mrb[14].mxu0 %v262_v39 }
  0xac   : > { %1720 = vmatprep.mubr.f32.mxu0 %v263_v40 }
  0xaf   : > { %1721 = vmatmul.mubr.f32.gmra.mrb[16].mxu0 %v264_v41 }
  0xb0   : > { %1723 = vmatprep.mubr.f32.mxu0 %v265_v42 }
  0xb3   : > { %1724 = vmatmul.mubr.f32.gmra.mrb[18].mxu0 %v266_v43 }
  0xb4   : > { %1726 = vmatprep.mubr.f32.mxu0 %v267_v44 }
  0xb7   : > { %1727 = vmatmul.mubr.f32.gmra.mrb[20].mxu0 %v268_v45 }
  0xb8   : > { %1729 = vmatprep.mubr.f32.mxu0 %v269_v46 }
  0xbb   : > { %1730 = vmatmul.mubr.f32.gmra.mrb[22].mxu0 %v270_v47 }
  0xbc   : > { %1732 = vmatprep.mubr.f32.mxu0 %v271_v48 }
  0xbf   : > { %1733 = vmatmul.mubr.f32.gmra.mrb[24].mxu0 %v272_v49 }
  0xc0   : > { %1735 = vmatprep.mubr.f32.mxu0 %v273_v50 }
  0xc3   : > { %1736 = vmatmul.mubr.f32.gmra.mrb[26].mxu0 %v274_v51 }
  0xc4   : > { %1738 = vmatprep.mubr.f32.mxu0 %v275_v52 }
  0xc7   : > { %1739 = vmatmul.mubr.f32.gmra.mrb[28].mxu0 %v276_v53 }
  0xc8   : > { %1741 = vmatprep.mubr.f32.mxu0 %v277_v54 }
  0xcb   : > { %1742 = vmatmul.mubr.f32.gmra.mrb[30].mxu0 %v278_v55 }
 0x162   : > { %v2507_v56 = vpop.f32.mrb[0].mxu0 }
 0x163   : > { %v2509_v57 = vpop.f32.mrb[1].mxu0 }
 0x164   : > { %520 = vadd.xlane.f32.xlu0 %v2509_v57 }
 0x166   : > { %v2512_v58 = vpop.f32.mrb[2].mxu0 }
 0x167   : > { %v2514_v59 = vpop.f32.mrb[3].mxu0 }
 0x168   : > { %522 = vadd.xlane.f32.xlu0 %v2507_v56  ;;  %524 = vadd.xlane.f32.xlu1 %v2514_v59 }
 0x16a   : > { %v2518_v60 = vpop.f32.mrb[4].mxu0 }
 0x16b   : > { %v2520_v61 = vpop.f32.mrb[5].mxu0 }
 0x16c   : > { %526 = vadd.xlane.f32.xlu1 %v2512_v58  ;;  %528 = vadd.xlane.f32.xlu0 %v2520_v61 }
 0x16e   : > { %v2524_v62 = vpop.f32.mrb[6].mxu0 }
 0x16f   : > { %v2526_v63 = vpop.f32.mrb[7].mxu0 }
 0x170   : > { %530 = vadd.xlane.f32.xlu1 %v2518_v60  ;;  %532 = vadd.xlane.f32.xlu0 %v2526_v63 }
 0x172   : > { %v2530_v0 = vpop.f32.mrb[8].mxu0 }
 0x173   : > { %v2532_v1 = vpop.f32.mrb[9].mxu0 }
 0x174   : > { %534 = vadd.xlane.f32.xlu1 %v2524_v62  ;;  %536 = vadd.xlane.f32.xlu0 %v2532_v1 }
 0x176   : > { %v2536_v2 = vpop.f32.mrb[10].mxu0 }
 0x177   : > { %v2538_v3 = vpop.f32.mrb[11].mxu0 }
 0x178   : > { %538 = vadd.xlane.f32.xlu1 %v2530_v0  ;;  %540 = vadd.xlane.f32.xlu0 %v2538_v3 }
 0x17a   : > { %v2542_v4 = vpop.f32.mrb[12].mxu0 }
 0x17b   : > { %v2544_v5 = vpop.f32.mrb[13].mxu0 }
 0x17c   : > { %542 = vadd.xlane.f32.xlu1 %v2536_v2  ;;  %544 = vadd.xlane.f32.xlu0 %v2544_v5 }
 0x17e   : > { %v2548_v6 = vpop.f32.mrb[14].mxu0 }
 0x17f   : > { %v2550_v7 = vpop.f32.mrb[15].mxu0 }
 0x180   : > { %546 = vadd.xlane.f32.xlu1 %v2542_v4  ;;  %548 = vadd.xlane.f32.xlu0 %v2550_v7 }
 0x182   : > { %v2554_v8 = vpop.f32.mrb[16].mxu0 }
 0x183   : > { %v2556_v9 = vpop.f32.mrb[17].mxu0 }
 0x184   : > { %550 = vadd.xlane.f32.xlu1 %v2548_v6  ;;  %552 = vadd.xlane.f32.xlu0 %v2556_v9 }
 0x186   : > { %v2560_v10 = vpop.f32.mrb[18].mxu0 }
 0x187   : > { %v2562_v11 = vpop.f32.mrb[19].mxu0 }
 0x188   : > { %554 = vadd.xlane.f32.xlu1 %v2554_v8  ;;  %556 = vadd.xlane.f32.xlu0 %v2562_v11 }
 0x18a   : > { %v2566_v12 = vpop.f32.mrb[20].mxu0 }
 0x18b   : > { %v2568_v13 = vpop.f32.mrb[21].mxu0 }
 0x18c   : > { %558 = vadd.xlane.f32.xlu1 %v2560_v10  ;;  %560 = vadd.xlane.f32.xlu0 %v2568_v13 }
 0x18e   : > { %v2572_v14 = vpop.f32.mrb[22].mxu0 }
 0x18f   : > { %v2574_v15 = vpop.f32.mrb[23].mxu0 }
 0x190   : > { %562 = vadd.xlane.f32.xlu1 %v2566_v12  ;;  %564 = vadd.xlane.f32.xlu0 %v2574_v15 }
 0x192   : > { %v2578_v16 = vpop.f32.mrb[24].mxu0 }
 0x193   : > { %v2580_v17 = vpop.f32.mrb[25].mxu0 }
 0x194   : > { %566 = vadd.xlane.f32.xlu1 %v2572_v14  ;;  %568 = vadd.xlane.f32.xlu0 %v2580_v17 }
 0x196   : > { %v2584_v18 = vpop.f32.mrb[26].mxu0 }
 0x197   : > { %v2586_v19 = vpop.f32.mrb[27].mxu0 }
 0x198   : > { %570 = vadd.xlane.f32.xlu1 %v2578_v16  ;;  %572 = vadd.xlane.f32.xlu0 %v2586_v19 }
 0x19a   : > { %v2590_v20 = vpop.f32.mrb[28].mxu0 }
 0x19b   : > { %v2592_v21 = vpop.f32.mrb[29].mxu0 }
 0x19c   : > { %574 = vadd.xlane.f32.xlu1 %v2584_v18  ;;  %576 = vadd.xlane.f32.xlu0 %v2592_v21 }
 0x19e   : > { %v2596_v22 = vpop.f32.mrb[30].mxu0 }
 0x19f   : > { %v2598_v23 = vpop.f32.mrb[31].mxu0 }
 0x1a0   : > { %578 = vadd.xlane.f32.xlu1 %v2590_v20  ;;  %580 = vadd.xlane.f32.xlu0 %v2598_v23 }
 0x1a4   : > { %582 = vadd.xlane.f32.xlu1 %v2596_v22 }
 0x1f1   : > { %v521_v24 = vpop.xlane.xlu0 %520 }
 0x1f2   : > { %v585_v25 = vmul.f32 0.0078125, %v521_v24 }
 0x1f4   : > { %v2604_v26 = vsub.f32 %v2509_v57, %v585_v25 }
 0x1f5   : > { %v523_v27 = vpop.xlane.xlu0 %522  ;;  %v525_v28 = vpop.xlane.xlu1 %524 }
 0x1f6   : > { %v586_v29 = vmul.f32 0.0078125, %v523_v27  ;;  %v587_v30 = vmul.f32 0.0078125, %v525_v28  ;;  %v649_v31 = vadd.f32 1e-10, %v2604_v26 }
 0x1f8   : > { %v2608_v32 = vsub.f32 %v2507_v56, %v586_v29  ;;  %v2611_v33 = vsub.f32 %v2514_v59, %v587_v30  ;;  %v681_v34 = vmul.f32 %v649_v31, %v649_v31 }
 0x1f9   : > { %v527_v35 = vpop.xlane.xlu1 %526  ;;  %v529_v36 = vpop.xlane.xlu0 %528 }
 0x1fa   : > { %v588_v37 = vmul.f32 0.0078125, %v527_v35  ;;  %v589_v38 = vmul.f32 0.0078125, %v529_v36  ;;  %713 = vadd.xlane.f32.xlu0 %v681_v34  ;;  %v650_v39 = vadd.f32 1e-10, %v2608_v32  ;;  %v651_v40 = vadd.f32 1e-10, %v2611_v33 }
 0x1fc   : > { %v2616_v41 = vsub.f32 %v2512_v58, %v588_v37  ;;  %v2619_v42 = vsub.f32 %v2520_v61, %v589_v38  ;;  %v682_v43 = vmul.f32 %v650_v39, %v650_v39  ;;  %v683_v44 = vmul.f32 %v651_v40, %v651_v40 }
 0x1fd   : > { %v531_v45 = vpop.xlane.xlu1 %530  ;;  %v533_v46 = vpop.xlane.xlu0 %532 }
 0x1fe   : > { %v590_v47 = vmul.f32 0.0078125, %v531_v45  ;;  %v591_v48 = vmul.f32 0.0078125, %v533_v46  ;;  %715 = vadd.xlane.f32.xlu1 %v682_v43  ;;  %717 = vadd.xlane.f32.xlu0 %v683_v44  ;;  %v652_v49 = vadd.f32 1e-10, %v2616_v41  ;;  %v653_v50 = vadd.f32 1e-10, %v2619_v42 }
 0x200   : > { %v2624_v51 = vsub.f32 %v2518_v60, %v590_v47  ;;  %v2627_v52 = vsub.f32 %v2526_v63, %v591_v48  ;;  %v684_v53 = vmul.f32 %v652_v49, %v652_v49  ;;  %v685_v54 = vmul.f32 %v653_v50, %v653_v50  ;;  %v1161_v47 = vld [vmem:[#allocation7] sm:$0xff]  ;;  %v1162_v48 = vld [vmem:[#allocation7 + $0x8] sm:$0xff] }
 0x201   : > { %v535_v55 = vpop.xlane.xlu1 %534  ;;  %v537_v56 = vpop.xlane.xlu0 %536 }
 0x202   : > { %v592_v57 = vmul.f32 0.0078125, %v535_v55  ;;  %v593_v58 = vmul.f32 0.0078125, %v537_v56  ;;  %719 = vadd.xlane.f32.xlu1 %v684_v53  ;;  %721 = vadd.xlane.f32.xlu0 %v685_v54  ;;  %v654_v59 = vadd.f32 1e-10, %v2624_v51  ;;  %v655_v61 = vadd.f32 1e-10, %v2627_v52 }
 0x203   : > { %v1856_v53 = vpack.c.bf16 %v1162_v48, %v1161_v47 }
 0x204   : > { %v2632_v24 = vsub.f32 %v2524_v62, %v592_v57  ;;  %v2635_v60 = vsub.f32 %v2532_v1, %v593_v58  ;;  %v686_v63 = vmul.f32 %v654_v59, %v654_v59  ;;  %v687_v25 = vmul.f32 %v655_v61, %v655_v61 }
 0x205   : > { %v539_v27 = vpop.xlane.xlu1 %538  ;;  %v541_v28 = vpop.xlane.xlu0 %540  ;;  %1857 = vmatprep.subr.bf16.mxu1 %v1856_v53 }
 0x206   : > { %v594_v29 = vmul.f32 0.0078125, %v539_v27  ;;  %v595_v30 = vmul.f32 0.0078125, %v541_v28  ;;  %723 = vadd.xlane.f32.xlu1 %v686_v63  ;;  %725 = vadd.xlane.f32.xlu0 %v687_v25  ;;  %v656_v31 = vadd.f32 1e-10, %v2632_v24  ;;  %v657_v34 = vadd.f32 1e-10, %v2635_v60 }
 0x207   : > { %1859 = vmatpush3.bf16.msra.mxu1 %v1856_v53  ;;  %v1163_v25 = vld [vmem:[#allocation7 + $0x10] sm:$0xff]  ;;  %v1164_v27 = vld [vmem:[#allocation7 + $0x18] sm:$0xff] }
 0x208   : > { %v2640_v35 = vsub.f32 %v2530_v0, %v594_v29  ;;  %v2643_v62 = vsub.f32 %v2538_v3, %v595_v30  ;;  %v688_v1 = vmul.f32 %v656_v31, %v656_v31  ;;  %v689_v36 = vmul.f32 %v657_v34, %v657_v34 }
 0x209   : > { %v543_v37 = vpop.xlane.xlu1 %542  ;;  %v545_v38 = vpop.xlane.xlu0 %544 }
 0x20a   : > { %v596_v39 = vmul.f32 0.0078125, %v543_v37  ;;  %v597_v40 = vmul.f32 0.0078125, %v545_v38  ;;  %727 = vadd.xlane.f32.xlu1 %v688_v1  ;;  %729 = vadd.xlane.f32.xlu0 %v689_v36  ;;  %v658_v43 = vadd.f32 1e-10, %v2640_v35  ;;  %v659_v44 = vadd.f32 1e-10, %v2643_v62 }
 0x20c   : > { %v2648_v45 = vsub.f32 %v2536_v2, %v596_v39  ;;  %v2651_v0 = vsub.f32 %v2544_v5, %v597_v40  ;;  %v690_v3 = vmul.f32 %v658_v43, %v658_v43  ;;  %v691_v46 = vmul.f32 %v659_v44, %v659_v44  ;;  %v1165_v39 = vld [vmem:[#allocation7 + $0x20] sm:$0xff]  ;;  %v1166_v40 = vld [vmem:[#allocation7 + $0x28] sm:$0xff] }
 0x20d   : > { %v547_v49 = vpop.xlane.xlu1 %546  ;;  %v549_v50 = vpop.xlane.xlu0 %548 }
 0x20e   : > { %v598_v54 = vmul.f32 0.0078125, %v547_v49  ;;  %v599_v55 = vmul.f32 0.0078125, %v549_v50  ;;  %731 = vadd.xlane.f32.xlu1 %v690_v3  ;;  %733 = vadd.xlane.f32.xlu0 %v691_v46  ;;  %v660_v56 = vadd.f32 1e-10, %v2648_v45  ;;  %v661_v57 = vadd.f32 1e-10, %v2651_v0 }
 0x210   : > { %v2656_v2 = vsub.f32 %v2542_v4, %v598_v54  ;;  %v2659_v5 = vsub.f32 %v2550_v7, %v599_v55  ;;  %v692_v58 = vmul.f32 %v660_v56, %v660_v56  ;;  %v693_v59 = vmul.f32 %v661_v57, %v661_v57  ;;  %v1167_v54 = vld [vmem:[#allocation7 + $0x30] sm:$0xff]  ;;  %v1168_v55 = vld [vmem:[#allocation7 + $0x38] sm:$0xff] }
 0x211   : > { %v551_v61 = vpop.xlane.xlu1 %550  ;;  %v553_v63 = vpop.xlane.xlu0 %552  ;;  %v1860_v4 = vpack.c.bf16 %v1164_v27, %v1163_v25 }
 0x212   : > { %v600_v28 = vmul.f32 0.0078125, %v551_v61  ;;  %v601_v29 = vmul.f32 0.0078125, %v553_v63  ;;  %735 = vadd.xlane.f32.xlu1 %v692_v58  ;;  %737 = vadd.xlane.f32.xlu0 %v693_v59  ;;  %v662_v30 = vadd.f32 1e-10, %v2656_v2  ;;  %v663_v31 = vadd.f32 1e-10, %v2659_v5 }
 0x213   : > { %1861 = vmatprep.subr.bf16.mxu1 %v1860_v4 }
 0x214   : > { %v2664_v34 = vsub.f32 %v2548_v6, %v600_v28  ;;  %v2667_v7 = vsub.f32 %v2556_v9, %v601_v29  ;;  %v694_v1 = vmul.f32 %v662_v30, %v662_v30  ;;  %v695_v36 = vmul.f32 %v663_v31, %v663_v31  ;;  %1863 = vmatpush3.bf16.msra.mxu1 %v1860_v4  ;;  %v1169_v29 = vld [vmem:[#allocation7 + $0x40] sm:$0xff]  ;;  %v1170_v30 = vld [vmem:[#allocation7 + $0x48] sm:$0xff] }
 0x215   : > { %v555_v37 = vpop.xlane.xlu1 %554  ;;  %v557_v38 = vpop.xlane.xlu0 %556  ;;  %v1864_v6 = vpack.c.bf16 %v1166_v40, %v1165_v39 }
 0x216   : > { %v602_v43 = vmul.f32 0.0078125, %v555_v37  ;;  %v603_v44 = vmul.f32 0.0078125, %v557_v38  ;;  %739 = vadd.xlane.f32.xlu1 %v694_v1  ;;  %741 = vadd.xlane.f32.xlu0 %v695_v36  ;;  %v664_v3 = vadd.f32 1e-10, %v2664_v34  ;;  %v665_v46 = vadd.f32 1e-10, %v2667_v7 }
 0x217   : > { %1865 = vmatprep.subr.bf16.mxu1 %v1864_v6 }
 0x218   : > { %v2672_v9 = vsub.f32 %v2554_v8, %v602_v43  ;;  %v2675_v47 = vsub.f32 %v2562_v11, %v603_v44  ;;  %v696_v48 = vmul.f32 %v664_v3, %v664_v3  ;;  %v697_v49 = vmul.f32 %v665_v46, %v665_v46  ;;  %1867 = vmatpush3.bf16.msra.mxu1 %v1864_v6 }
 0x219   : > { %v559_v50 = vpop.xlane.xlu1 %558  ;;  %v561_v53 = vpop.xlane.xlu0 %560  ;;  %v1868_v8 = vpack.c.bf16 %v1168_v55, %v1167_v54 }
 0x21a   : > { %v604_v56 = vmul.f32 0.0078125, %v559_v50  ;;  %v605_v57 = vmul.f32 0.0078125, %v561_v53  ;;  %743 = vadd.xlane.f32.xlu1 %v696_v48  ;;  %745 = vadd.xlane.f32.xlu0 %v697_v49  ;;  %v666_v58 = vadd.f32 1e-10, %v2672_v9  ;;  %v667_v59 = vadd.f32 1e-10, %v2675_v47 }
 0x21b   : > { %1869 = vmatprep.subr.bf16.mxu1 %v1868_v8  ;;  %v1171_v48 = vld [vmem:[#allocation7 + $0x50] sm:$0xff] }
 0x21c   : > { %v2680_v11 = vsub.f32 %v2560_v10, %v604_v56  ;;  %v2683_v61 = vsub.f32 %v2568_v13, %v605_v57  ;;  %v698_v63 = vmul.f32 %v666_v58, %v666_v58  ;;  %v699_v25 = vmul.f32 %v667_v59, %v667_v59  ;;  %1871 = vmatpush3.bf16.msra.mxu1 %v1868_v8 }
 0x21d   : > { %v563_v27 = vpop.xlane.xlu1 %562  ;;  %v565_v28 = vpop.xlane.xlu0 %564  ;;  %v1872_v10 = vpack.c.bf16 %v1170_v30, %v1169_v29 }
 0x21e   : > { %v606_v31 = vmul.f32 0.0078125, %v563_v27  ;;  %v607_v4 = vmul.f32 0.0078125, %v565_v28  ;;  %747 = vadd.xlane.f32.xlu1 %v698_v63  ;;  %749 = vadd.xlane.f32.xlu0 %v699_v25  ;;  %v668_v1 = vadd.f32 1e-10, %v2680_v11  ;;  %v669_v36 = vadd.f32 1e-10, %v2683_v61 }
 0x21f   : > { %1873 = vmatprep.subr.bf16.mxu1 %v1872_v10  ;;  %v1173_v63 = vld [vmem:[#allocation7 + $0x60] sm:$0xff] }
 0x220   : > { %v2688_v13 = vsub.f32 %v2566_v12, %v606_v31  ;;  %v2691_v37 = vsub.f32 %v2574_v15, %v607_v4  ;;  %v700_v38 = vmul.f32 %v668_v1, %v668_v1  ;;  %v701_v39 = vmul.f32 %v669_v36, %v669_v36  ;;  %1875 = vmatpush3.bf16.msra.mxu1 %v1872_v10  ;;  %v1172_v12 = vld [vmem:[#allocation7 + $0x58] sm:$0xff] }
 0x221   : > { %v567_v40 = vpop.xlane.xlu1 %566  ;;  %v569_v43 = vpop.xlane.xlu0 %568  ;;  %v1876_v56 = vpack.c.bf16 %v1172_v12, %v1171_v48 }
 0x222   : > { %v608_v44 = vmul.f32 0.0078125, %v567_v40  ;;  %v609_v3 = vmul.f32 0.0078125, %v569_v43  ;;  %751 = vadd.xlane.f32.xlu1 %v700_v38  ;;  %753 = vadd.xlane.f32.xlu0 %v701_v39  ;;  %v670_v46 = vadd.f32 1e-10, %v2688_v13  ;;  %v671_v6 = vadd.f32 1e-10, %v2691_v37 }
 0x223   : > { %1877 = vmatprep.subr.bf16.mxu1 %v1876_v56  ;;  %v1176_v38 = vld [vmem:[#allocation7 + $0x78] sm:$0xff] }
 0x224   : > { %v2696_v49 = vsub.f32 %v2572_v14, %v608_v44  ;;  %v2699_v15 = vsub.f32 %v2580_v17, %v609_v3  ;;  %v702_v50 = vmul.f32 %v670_v46, %v670_v46  ;;  %v703_v53 = vmul.f32 %v671_v6, %v671_v6  ;;  %v1174_v14 = vld [vmem:[#allocation7 + $0x68] sm:$0xff]  ;;  %1879 = vmatpush3.bf16.msra.mxu1 %v1876_v56 }
 0x225   : > { %v571_v54 = vpop.xlane.xlu1 %570  ;;  %v573_v55 = vpop.xlane.xlu0 %572  ;;  %v1880_v31 = vpack.c.bf16 %v1174_v14, %v1173_v63 }
 0x226   : > { %v610_v57 = vmul.f32 0.0078125, %v571_v54  ;;  %v611_v58 = vmul.f32 0.0078125, %v573_v55  ;;  %755 = vadd.xlane.f32.xlu1 %v702_v50  ;;  %757 = vadd.xlane.f32.xlu0 %v703_v53  ;;  %v672_v59 = vadd.f32 1e-10, %v2696_v49  ;;  %v673_v8 = vadd.f32 1e-10, %v2699_v15 }
 0x227   : > { %1881 = vmatprep.subr.bf16.mxu1 %v1880_v31 }
 0x228   : > { %v2704_v25 = vsub.f32 %v2578_v16, %v610_v57  ;;  %v2707_v17 = vsub.f32 %v2586_v19, %v611_v58  ;;  %v704_v27 = vmul.f32 %v672_v59, %v672_v59  ;;  %v705_v28 = vmul.f32 %v673_v8, %v673_v8  ;;  %v1175_v16 = vld [vmem:[#allocation7 + $0x70] sm:$0xff]  ;;  %1883 = vmatpush3.bf16.msra.mxu1 %v1880_v31 }
 0x229   : > { %v575_v29 = vpop.xlane.xlu1 %574  ;;  %v577_v30 = vpop.xlane.xlu0 %576  ;;  %v1884_v46 = vpack.c.bf16 %v1176_v38, %v1175_v16 }
 0x22a   : > { %3324 = vst [vmem:[#allocation12_spill] sm:$0xff] %v2704_v25  ;;  %3325 = vst [vmem:[#allocation13_spill] sm:$0xff] %v2707_v17  ;;  %v612_v4 = vmul.f32 0.0078125, %v575_v29  ;;  %v613_v1 = vmul.f32 0.0078125, %v577_v30  ;;  %759 = vadd.xlane.f32.xlu1 %v704_v27  ;;  %761 = vadd.xlane.f32.xlu0 %v705_v28  ;;  %v674_v36 = vadd.f32 1e-10, %v2704_v25 }
 0x22b   : > { %v675_v10 = vadd.f32 1e-10, %v2707_v17  ;;  %1885 = vmatprep.subr.bf16.mxu1 %v1884_v46 }
 0x22c   : > { %v2712_v19 = vsub.f32 %v2584_v18, %v612_v4  ;;  %v2715_v39 = vsub.f32 %v2592_v21, %v613_v1  ;;  %v706_v40 = vmul.f32 %v674_v36, %v674_v36  ;;  %1887 = vmatpush3.bf16.msra.mxu1 %v1884_v46 }
 0x22d   : > { %v707_v43 = vmul.f32 %v675_v10, %v675_v10  ;;  %v579_v44 = vpop.xlane.xlu1 %578  ;;  %v581_v3 = vpop.xlane.xlu0 %580 }
 0x22e   : > { %3326 = vst [vmem:[#allocation14_spill] sm:$0xff] %v2712_v19  ;;  %3327 = vst [vmem:[#allocation15_spill] sm:$0xff] %v2715_v39  ;;  %v614_v6 = vmul.f32 0.0078125, %v579_v44  ;;  %v615_v48 = vmul.f32 0.0078125, %v581_v3  ;;  %763 = vadd.xlane.f32.xlu1 %v706_v40  ;;  %v676_v12 = vadd.f32 1e-10, %v2712_v19 }
 0x22f   : > { %765 = vadd.xlane.f32.xlu0 %v707_v43  ;;  %v677_v50 = vadd.f32 1e-10, %v2715_v39 }
 0x230   : > { %v2720_v18 = vsub.f32 %v2590_v20, %v614_v6  ;;  %v2723_v21 = vsub.f32 %v2598_v23, %v615_v48  ;;  %v708_v53 = vmul.f32 %v676_v12, %v676_v12 }
 0x231   : > { %v709_v54 = vmul.f32 %v677_v50, %v677_v50  ;;  %v583_v55 = vpop.xlane.xlu1 %582 }
 0x232   : > { %3328 = vst [vmem:[#allocation16_spill] sm:$0xff] %v2720_v18  ;;  %3329 = vst [vmem:[#allocation17_spill] sm:$0xff] %v2723_v21  ;;  %v616_v56 = vmul.f32 0.0078125, %v583_v55  ;;  %767 = vadd.xlane.f32.xlu1 %v708_v53  ;;  %v678_v57 = vadd.f32 1e-10, %v2720_v18 }
 0x233   : > { %769 = vadd.xlane.f32.xlu0 %v709_v54  ;;  %v679_v58 = vadd.f32 1e-10, %v2723_v21 }
 0x234   : > { %v2728_v59 = vsub.f32 %v2596_v22, %v616_v56  ;;  %v710_v8 = vmul.f32 %v678_v57, %v678_v57 }
 0x235   : > { %v711_v20 = vmul.f32 %v679_v58, %v679_v58 }
 0x236   : > { %3330 = vst [vmem:[#allocation18_spill] sm:$0xff] %v2728_v59  ;;  %771 = vadd.xlane.f32.xlu1 %v710_v8  ;;  %v680_v23 = vadd.f32 1e-10, %v2728_v59 }
 0x237   : > { %773 = vadd.xlane.f32.xlu0 %v711_v20 }
 0x238   : > { %v712_v63 = vmul.f32 %v680_v23, %v680_v23 }
 0x23a   : > { %775 = vadd.xlane.f32.xlu1 %v712_v63 }
 0x287   : > { %v714_v14 = vpop.xlane.xlu0 %713 }
 0x288   : > { %v777_v27 = vmul.f32 0.0078125, %v714_v14 }
 0x28a   : > { %v809_v28 = vadd.f32 1e-10, %v777_v27 }
 0x28b   : > { %v716_v29 = vpop.xlane.xlu1 %715  ;;  %v718_v30 = vpop.xlane.xlu0 %717 }
 0x28c   : > { %1959 = vrsqrt.f32 %v809_v28  ;;  %v778_v31 = vmul.f32 0.0078125, %v716_v29  ;;  %v779_v4 = vmul.f32 0.0078125, %v718_v30  ;;  %vm843_vm0 = vcmp.eq.f32.partialorder %v809_v28, inf }
 0x28d   : > { %v846_v55 = vand.u32 2147483648, %v809_v28  ;;  %vm845_vm1 = vcmp.eq.f32.partialorder %v809_v28, 0.0 }
 0x28e   : > { %v810_v1 = vadd.f32 1e-10, %v778_v31  ;;  %v811_v36 = vadd.f32 1e-10, %v779_v4 }
 0x28f   : > { %v720_v22 = vpop.xlane.xlu1 %719  ;;  %v722_v10 = vpop.xlane.xlu0 %721 }
 0x290   : > { %1961 = vrsqrt.f32 %v810_v1  ;;  %v780_v16 = vmul.f32 0.0078125, %v720_v22  ;;  %v781_v38 = vmul.f32 0.0078125, %v722_v10  ;;  %vm850_vm2 = vcmp.eq.f32.partialorder %v810_v1, inf }
 0x291   : > { %1963 = vrsqrt.f32 %v811_v36  ;;  %v853_v31 = vand.u32 2147483648, %v810_v1  ;;  %vm857_vm3 = vcmp.eq.f32.partialorder %v811_v36, inf  ;;  %vm852_vm4 = vcmp.eq.f32.partialorder %v810_v1, 0.0 }
 0x292   : > { %v2731_v40 = vadd.f32 1e-10, %v780_v16  ;;  %v2734_v6 = vadd.f32 1e-10, %v781_v38  ;;  %vm859_vm5 = vcmp.eq.f32.partialorder %v811_v36, 0.0 }
 0x293   : > { %v724_v43 = vpop.xlane.xlu1 %723  ;;  %v726_v44 = vpop.xlane.xlu0 %725 }
 0x294   : > { %1965 = vrsqrt.f32 %v2731_v40  ;;  %v782_v3 = vmul.f32 0.0078125, %v724_v43  ;;  %v783_v54 = vmul.f32 0.0078125, %v726_v44  ;;  %v860_v44 = vand.u32 2147483648, %v811_v36 }
 0x295   : > { %1967 = vrsqrt.f32 %v2734_v6  ;;  %vm864_vm6 = vcmp.eq.f32.partialorder %v2731_v40, inf  ;;  %vm871_vm7 = vcmp.eq.f32.partialorder %v2734_v6, inf  ;;  %vm866_vm8 = vcmp.eq.f32.partialorder %v2731_v40, 0.0 }
 0x296   : > { %v1960_v46 = vpop.eup %1959  ;;  %v2736_v53 = vadd.f32 1e-10, %v782_v3  ;;  %v2740_v30 = vadd.f32 1e-10, %v783_v54  ;;  %vm873_vm9 = vcmp.eq.f32.partialorder %v2734_v6, 0.0 }
 0x297   : > { %v728_v48 = vpop.xlane.xlu1 %727  ;;  %v730_v12 = vpop.xlane.xlu0 %729  ;;  %v842_v50 = vmul.f32 %v1960_v46, %v809_v28 }
 0x298   : > { %v784_v27 = vmul.f32 0.0078125, %v728_v48  ;;  %1969 = vrsqrt.f32 %v2736_v53  ;;  %v785_v4 = vmul.f32 0.0078125, %v730_v12  ;;  %vm878_vm10 = vcmp.eq.f32.partialorder %v2736_v53, inf }
 0x299   : > { %v844_v57 = vsel %vm843_vm0, %v809_v28, %v842_v50  ;;  %vm885_vm11 = vcmp.eq.f32.partialorder %v2740_v30, inf  ;;  %vm880_vm12 = vcmp.eq.f32.partialorder %v2736_v53, 0.0  ;;  %vm887_vm13 = vcmp.eq.f32.partialorder %v2740_v30, 0.0 }
 0x29a   : > { %v1962_v56 = vpop.eup %1961  ;;  %v847_v63 = vsel %vm845_vm1, %v846_v55, %v844_v57  ;;  %v2742_v3 = vadd.f32 1e-10, %v784_v27  ;;  %v2747_v12 = vadd.f32 1e-10, %v785_v4 }
 0x29b   : > { %v1964_v58 = vpop.eup %1963  ;;  %v849_v8 = vmul.f32 %v1962_v56, %v810_v1  ;;  %v732_v20 = vpop.xlane.xlu1 %731  ;;  %v1065_v29 = vadd.f32 1e-10, %v847_v63  ;;  %v867_v56 = vand.u32 2147483648, %v2731_v40  ;;  %v874_v63 = vand.u32 2147483648, %v2734_v6 }
 0x29c   : > { %v734_v23 = vpop.xlane.xlu0 %733  ;;  %v856_v14 = vmul.f32 %v1964_v58, %v811_v36  ;;  %v786_v10 = vmul.f32 0.0078125, %v732_v20  ;;  %vm892_vm14 = vcmp.eq.f32.partialorder %v2742_v3, inf  ;;  %vm899_vm15 = vcmp.eq.f32.partialorder %v2747_v12, inf }
 0x29d   : > { %1971 = vrcp.f32 %v1065_v29  ;;  %v851_v38 = vsel %vm850_vm2, %v810_v1, %v849_v8  ;;  %v787_v48 = vmul.f32 0.0078125, %v734_v23  ;;  %vm894_vm0 = vcmp.eq.f32.partialorder %v2742_v3, 0.0 }
 0x29e   : > { %v1966_v22 = vpop.eup %1965  ;;  %v858_v43 = vsel %vm857_vm3, %v811_v36, %v856_v14  ;;  %1973 = vrsqrt.f32 %v2740_v30  ;;  %v854_v54 = vsel %vm852_vm4, %v853_v31, %v851_v38  ;;  %v2750_v57 = vadd.f32 1e-10, %v786_v10 }
 0x29f   : > { %v736_v16 = vpop.xlane.xlu1 %735  ;;  %v863_v46 = vmul.f32 %v1966_v22, %v2731_v40  ;;  %v861_v55 = vsel %vm859_vm5, %v860_v44, %v858_v43  ;;  %v1066_v36 = vadd.f32 1e-10, %v854_v54  ;;  %v1968_v20 = vpop.eup %1967  ;;  %1975 = vrsqrt.f32 %v2742_v3 }
 0x2a0   : > { %v738_v28 = vpop.xlane.xlu0 %737  ;;  %v788_v50 = vmul.f32 0.0078125, %v736_v16  ;;  %v1067_v23 = vadd.f32 1e-10, %v861_v55  ;;  %v2755_v14 = vadd.f32 1e-10, %v787_v48  ;;  %v870_v22 = vmul.f32 %v1968_v20, %v2734_v6 }
 0x2a1   : > { %v789_v58 = vmul.f32 0.0078125, %v738_v28  ;;  %1977 = vrcp.f32 %v1066_v36  ;;  %v865_v29 = vsel %vm864_vm6, %v2731_v40, %v863_v46  ;;  %v881_v38 = vand.u32 2147483648, %v2736_v53 }
 0x2a2   : > { %1979 = vrsqrt.f32 %v2747_v12  ;;  %v2761_v31 = vadd.f32 1e-10, %v788_v50  ;;  %v1970_v4 = vpop.eup %1969  ;;  %v868_v44 = vsel %vm866_vm8, %v867_v56, %v865_v29  ;;  %v872_v20 = vsel %vm871_vm7, %v2734_v6, %v870_v22 }
 0x2a3   : > { %v740_v8 = vpop.xlane.xlu1 %739  ;;  %1981 = vrsqrt.f32 %v2750_v57  ;;  %v2768_v10 = vadd.f32 1e-10, %v789_v58  ;;  %v877_v54 = vmul.f32 %v1970_v4, %v2736_v53  ;;  %v1068_v36 = vadd.f32 1e-10, %v868_v44 }
 0x2a4   : > { %v742_v1 = vpop.xlane.xlu0 %741  ;;  %v790_v27 = vmul.f32 0.0078125, %v740_v8  ;;  %1983 = vrcp.f32 %v1067_v23  ;;  %v875_v22 = vsel %vm873_vm9, %v874_v63, %v872_v20  ;;  %vm906_vm1 = vcmp.eq.f32.partialorder %v2750_v57, inf }
 0x2a5   : > { %v791_v43 = vmul.f32 0.0078125, %v742_v1  ;;  %1985 = vrsqrt.f32 %v2755_v14  ;;  %vm913_vm2 = vcmp.eq.f32.partialorder %v2755_v14, inf  ;;  %vm901_vm3 = vcmp.eq.f32.partialorder %v2747_v12, 0.0 }
 0x2a6   : > { %v2772_v40 = vadd.f32 1e-10, %v790_v27  ;;  %1987 = vrsqrt.f32 %v2761_v31  ;;  %vm920_vm4 = vcmp.eq.f32.partialorder %v2761_v31, inf  ;;  %vm927_vm5 = vcmp.eq.f32.partialorder %v2768_v10, inf }
 0x2a7   : > { %v744_v16 = vpop.xlane.xlu1 %743  ;;  %v1972_v46 = vpop.eup %1971  ;;  %1989 = vrsqrt.f32 %v2768_v10  ;;  %v2785_v29 = vadd.f32 1e-10, %v791_v43  ;;  %v879_v43 = vsel %vm878_vm10, %v2736_v53, %v877_v54  ;;  %vm908_vm6 = vcmp.eq.f32.partialorder %v2750_v57, 0.0 }
 0x2a8   : > { %v746_v28 = vpop.xlane.xlu0 %745  ;;  %v792_v48 = vmul.f32 0.0078125, %v744_v16  ;;  %v1974_v58 = vpop.eup %1973  ;;  %v1098_v56 = vmul.f32 %v1972_v46, %v2604_v26  ;;  %1991 = vrsqrt.f32 %v2772_v40  ;;  %vm934_vm7 = vcmp.eq.f32.partialorder %v2772_v40, inf }
 0x2a9   : > { %v793_v50 = vmul.f32 0.0078125, %v746_v28  ;;  %v1976_v28 = vpop.eup %1975  ;;  %1993 = vrcp.f32 %v1068_v36  ;;  %vm915_vm8 = vcmp.eq.f32.partialorder %v2755_v14, 0.0  ;;  %vm941_vm9 = vcmp.eq.f32.partialorder %v2785_v29, inf }
 0x2aa   : > { %v2789_v4 = vadd.f32 1e-10, %v792_v48  ;;  %1776 = vmatprep.mubr.f32.mxu1 %v1098_v56  ;;  %v884_v48 = vmul.f32 %v1974_v58, %v2740_v30  ;;  %1995 = vrsqrt.f32 %v2785_v29  ;;  %v882_v56 = vsel %vm880_vm12, %v881_v38, %v879_v43 }
 0x2ab   : > { %v748_v8 = vpop.xlane.xlu1 %747  ;;  %v2791_v26 = vadd.f32 1e-10, %v793_v50  ;;  %v1978_v46 = vpop.eup %1977  ;;  %v891_v23 = vmul.f32 %v1976_v28, %v2742_v3  ;;  %vm922_vm10 = vcmp.eq.f32.partialorder %v2761_v31, 0.0 }
 0x2ac   : > { %v750_v1 = vpop.xlane.xlu0 %749  ;;  %v794_v16 = vmul.f32 0.0078125, %v748_v8  ;;  %v1980_v36 = vpop.eup %1979  ;;  %v1100_v63 = vmul.f32 %v1978_v46, %v2608_v32  ;;  %1997 = vrsqrt.f32 %v2789_v4  ;;  %v886_v28 = vsel %vm885_vm11, %v2740_v30, %v884_v48 }
 0x2ad   : > { %v795_v44 = vmul.f32 0.0078125, %v750_v1  ;;  %v1069_v1 = vadd.f32 1e-10, %v875_v22  ;;  %v1982_v20 = vpop.eup %1981  ;;  %1999 = vrsqrt.f32 %v2791_v26  ;;  %vm948_vm11 = vcmp.eq.f32.partialorder %v2789_v4, inf }
 0x2ae   : > { %v2803_v6 = vadd.f32 1e-10, %v794_v16  ;;  %v1984_v22 = vpop.eup %1983  ;;  %1777 = vmatmul.mubr.f32.vlgmr.msra.gmra.mrb[0].mxu1 %v1100_v63  ;;  %v1070_v16 = vadd.f32 1e-10, %v882_v56  ;;  %vm955_vm12 = vcmp.eq.f32.partialorder %v2791_v26, inf }
 0x2af   : > { %v752_v8 = vpop.xlane.xlu1 %751  ;;  %v2815_v32 = vadd.f32 1e-10, %v795_v44  ;;  %v1986_v46 = vpop.eup %1985  ;;  %v1102_v53 = vmul.f32 %v1984_v22, %v2611_v33  ;;  %2001 = vrcp.f32 %v1069_v1  ;;  %v905_v22 = vmul.f32 %v1982_v20, %v2750_v57 }
 0x2b0   : > { %v754_v27 = vpop.xlane.xlu0 %753  ;;  %v796_v54 = vmul.f32 0.0078125, %v752_v8  ;;  %v1988_v8 = vpop.eup %1987  ;;  %2003 = vrsqrt.f32 %v2803_v6  ;;  %v2832_v48 = vmul.f32 %v1986_v46, %v2755_v14 }
 0x2b1   : > { %v797_v50 = vmul.f32 0.0078125, %v754_v27  ;;  %v898_v27 = vmul.f32 %v1980_v36, %v2747_v12  ;;  %v1990_v58 = vpop.eup %1989  ;;  %1779 = vmatprep.mubr.f32.mxu1 %v1102_v53  ;;  %2005 = vrsqrt.f32 %v2815_v32  ;;  %v3331_v53 = vand.u32 2147483648, %v2740_v30 }
 0x2b2   : > { %v2824_v44 = vadd.f32 1e-10, %v796_v54  ;;  %v1992_v54 = vpop.eup %1991  ;;  %2007 = vrcp.f32 %v1070_v16  ;;  %v2845_v59 = vmul.f32 %v1988_v8, %v2761_v31  ;;  %v2848_v36 = vmul.f32 %v1990_v58, %v2768_v10 }
 0x2b3   : > { %v756_v38 = vpop.xlane.xlu1 %755  ;;  %v2828_v33 = vadd.f32 1e-10, %v797_v50  ;;  %v889_v20 = vsel %vm887_vm13, %v3331_v53, %v886_v28  ;;  %v893_v58 = vsel %vm892_vm14, %v2742_v3, %v891_v23  ;;  %v2862_v21 = vmul.f32 %v1992_v54, %v2772_v40 }
 0x2b4   : > { %v758_v43 = vpop.xlane.xlu0 %757  ;;  %v798_v63 = vmul.f32 0.0078125, %v756_v38  ;;  %2009 = vrsqrt.f32 %v2824_v44  ;;  %v1071_v53 = vadd.f32 1e-10, %v889_v20  ;;  %vm962_vm13 = vcmp.eq.f32.partialorder %v2803_v6, inf }
 0x2b5   : > { %v799_v1 = vmul.f32 0.0078125, %v758_v43  ;;  %v1994_v43 = vpop.eup %1993  ;;  %2011 = vrsqrt.f32 %v2828_v33  ;;  %vm929_vm14 = vcmp.eq.f32.partialorder %v2768_v10, 0.0 }
 0x2b6   : > { %v2838_v38 = vadd.f32 1e-10, %v798_v63  ;;  %v1104_v63 = vmul.f32 %v1994_v43, %v2616_v41  ;;  %v1996_v28 = vpop.eup %1995  ;;  %v3332_v41 = vand.u32 2147483648, %v2742_v3 }
 0x2b7   : > { %v760_v50 = vpop.xlane.xlu1 %759  ;;  %v2855_v30 = vadd.f32 1e-10, %v799_v1  ;;  %v1998_v55 = vpop.eup %1997 }
 0x2b8   : > { %v762_v46 = vpop.xlane.xlu0 %761  ;;  %v800_v8 = vmul.f32 0.0078125, %v760_v50  ;;  %1780 = vmatmul.mubr.f32.gmra.mrb[2].mxu1 %v1104_v63  ;;  %2013 = vrsqrt.f32 %v2838_v38  ;;  %v896_v1 = vsel %vm894_vm0, %v3332_v41, %v893_v58  ;;  %v900_v50 = vsel %vm899_vm15, %v2747_v12, %v898_v27  ;;  %v2000_v20 = vpop.eup %1999 }
 0x2b9   : > { %v801_v56 = vmul.f32 0.0078125, %v762_v46  ;;  %2015 = vrcp.f32 %v1071_v53  ;;  %v2002_v63 = vpop.eup %2001  ;;  %v1072_v3 = vadd.f32 1e-10, %v896_v1  ;;  %v3333_v41 = vand.u32 2147483648, %v2747_v12 }
 0x2ba   : > { %v2872_v46 = vadd.f32 1e-10, %v800_v8  ;;  %2017 = vrsqrt.f32 %v2855_v30  ;;  %v2004_v27 = vpop.eup %2003  ;;  %v2882_v8 = vmul.f32 %v1996_v28, %v2785_v29  ;;  %v1106_v53 = vmul.f32 %v2002_v63, %v2619_v42 }
 0x2bb   : > { %v764_v43 = vpop.xlane.xlu1 %763  ;;  %v2874_v23 = vadd.f32 1e-10, %v801_v56  ;;  %v903_v16 = vsel %vm901_vm3, %v3333_v41, %v900_v50  ;;  %v2888_v18 = vmul.f32 %v1998_v55, %v2789_v4  ;;  %v907_v42 = vsel %vm906_vm1, %v2750_v57, %v905_v22 }
 0x2bc   : > { %v766_v54 = vpop.xlane.xlu0 %765  ;;  %v802_v58 = vmul.f32 0.0078125, %v764_v43  ;;  %2019 = vrsqrt.f32 %v2872_v46  ;;  %v2006_v43 = vpop.eup %2005  ;;  %1782 = vmatprep.mubr.f32.mxu1 %v1106_v53  ;;  %v1073_v28 = vadd.f32 1e-10, %v903_v16  ;;  %v2899_v55 = vmul.f32 %v2000_v20, %v2791_v26 }
 0x2bd   : > { %2021 = vrsqrt.f32 %v2874_v23  ;;  %v803_v50 = vmul.f32 0.0078125, %v766_v54  ;;  %v2008_v63 = vpop.eup %2007  ;;  %v2902_v41 = vmul.f32 %v2004_v27, %v2803_v6  ;;  %v3334_v20 = vand.u32 2147483648, %v2750_v57 }
 0x2be   : > { %v2892_v1 = vadd.f32 1e-10, %v802_v58  ;;  %2023 = vrcp.f32 %v1072_v3  ;;  %v2010_v3 = vpop.eup %2009  ;;  %v1108_v16 = vmul.f32 %v2008_v63, %v2624_v51  ;;  %v914_v53 = vsel %vm913_vm2, %v2755_v14, %v2832_v48 }
 0x2bf   : > { %v768_v12 = vpop.xlane.xlu1 %767  ;;  %2025 = vrcp.f32 %v1073_v28  ;;  %v2907_v54 = vadd.f32 1e-10, %v803_v50  ;;  %v2012_v39 = vpop.eup %2011  ;;  %v910_v27 = vsel %vm908_vm6, %v3334_v20, %v907_v42  ;;  %v2919_v51 = vmul.f32 %v2006_v43, %v2815_v32 }
 0x2c0   : > { %v770_v22 = vpop.xlane.xlu0 %769  ;;  %2027 = vrsqrt.f32 %v2892_v1  ;;  %v804_v56 = vmul.f32 0.0078125, %v768_v12  ;;  %1783 = vmatmul.mubr.f32.gmra.mrb[4].mxu1 %v1108_v16  ;;  %v1074_v12 = vadd.f32 1e-10, %v910_v27  ;;  %v2929_v43 = vmul.f32 %v2010_v3, %v2824_v44 }
 0x2c1   : > { %2029 = vrsqrt.f32 %v2907_v54  ;;  %v805_v48 = vmul.f32 0.0078125, %v770_v22  ;;  %v3335_v16 = vand.u32 2147483648, %v2755_v14  ;;  %v921_v50 = vsel %vm920_vm4, %v2761_v31, %v2845_v59 }
 0x2c2   : > { %v2014_v57 = vpop.eup %2013  ;;  %v2924_v42 = vadd.f32 1e-10, %v804_v56  ;;  %v2938_v28 = vmul.f32 %v2012_v39, %v2828_v33  ;;  %2031 = vrcp.f32 %v1074_v12  ;;  %v3336_v59 = vand.u32 2147483648, %v2761_v31 }
 0x2c3   : > { %v772_v58 = vpop.xlane.xlu1 %771  ;;  %v2016_v63 = vpop.eup %2015  ;;  %v917_v20 = vsel %vm915_vm8, %v3335_v16, %v914_v53  ;;  %v2944_v53 = vadd.f32 1e-10, %v805_v48  ;;  %v2949_v39 = vmul.f32 %v2014_v57, %v2838_v38  ;;  %v1028_v48 = vand.u32 2147483648, %v2907_v54 }
 0x2c4   : > { %v806_v27 = vmul.f32 0.0078125, %v772_v58  ;;  %v2018_v56 = vpop.eup %2017  ;;  %v1110_v22 = vmul.f32 %v2016_v63, %v2627_v52  ;;  %2033 = vrsqrt.f32 %v2924_v42  ;;  %v1075_v14 = vadd.f32 1e-10, %v917_v20  ;;  %v774_v19 = vpop.xlane.xlu0 %773 }
 0x2c5   : > { %v924_v58 = vsel %vm922_vm10, %v3336_v59, %v921_v50  ;;  %v1021_v52 = vand.u32 2147483648, %v2892_v1  ;;  %v2955_v25 = vmul.f32 %v2018_v56, %v2855_v30  ;;  %v928_v31 = vsel %vm927_vm5, %v2768_v10, %v2848_v36 }
 0x2c6   : > { %v2020_v3 = vpop.eup %2019  ;;  %1785 = vmatprep.mubr.f32.mxu1 %v1110_v22  ;;  %v1076_v12 = vadd.f32 1e-10, %v924_v58  ;;  %v2952_v63 = vadd.f32 1e-10, %v806_v27  ;;  %2035 = vrcp.f32 %v1075_v14  ;;  %v1035_v20 = vand.u32 2147483648, %v2924_v42 }
 0x2c7   : > { %v2022_v16 = vpop.eup %2021  ;;  %v2964_v50 = vmul.f32 %v2020_v3, %v2872_v46  ;;  %2037 = vrsqrt.f32 %v2944_v53  ;;  %v776_v27 = vpop.xlane.xlu1 %775  ;;  %v807_v36 = vmul.f32 0.0078125, %v774_v19  ;;  %vm969_vm15 = vcmp.eq.f32.partialorder %v2815_v32, inf }
 0x2c8   : > { %v2024_v17 = vpop.eup %2023  ;;  %v2971_v22 = vmul.f32 %v2022_v16, %v2874_v23  ;;  %2039 = vrcp.f32 %v1076_v12  ;;  %v935_v59 = vsel %vm934_vm7, %v2772_v40, %v2862_v21  ;;  %vm936_vm0 = vcmp.eq.f32.partialorder %v2772_v40, 0.0 }
 0x2c9   : > { %v1112_v57 = vmul.f32 %v2024_v17, %v2632_v24  ;;  %v2026_v56 = vpop.eup %2025  ;;  %2041 = vrsqrt.f32 %v2952_v63  ;;  %v3337_v17 = vand.u32 2147483648, %v2768_v10  ;;  %v2983_v12 = vadd.f32 1e-10, %v807_v36 }
 0x2ca   : > { %v2028_v14 = vpop.eup %2027  ;;  %v1114_v24 = vmul.f32 %v2026_v56, %v2635_v60  ;;  %v808_v19 = vmul.f32 0.0078125, %v776_v27  ;;  %v1042_v60 = vand.u32 2147483648, %v2944_v53  ;;  %v3338_v10 = vand.u32 2147483648, %v2772_v40 }
 0x2cb   : > { %1786 = vmatmul.mubr.f32.gmra.mrb[6].mxu1 %v1112_v57  ;;  %v931_v3 = vsel %vm929_vm14, %v3337_v17, %v928_v31  ;;  %v2030_v58 = vpop.eup %2029  ;;  %v1049_v57 = vand.u32 2147483648, %v2952_v63  ;;  %v942_v21 = vsel %vm941_vm9, %v2785_v29, %v2882_v8  ;;  %vm976_vm1 = vcmp.eq.f32.partialorder %v2824_v44, inf }
 0x2cc   : > { %v1077_v16 = vadd.f32 1e-10, %v931_v3  ;;  %1788 = vmatprep.mubr.f32.mxu1 %v1114_v24  ;;  %v938_v31 = vsel %vm936_vm0, %v3338_v10, %v935_v59  ;;  %vm983_vm2 = vcmp.eq.f32.partialorder %v2828_v33, inf  ;;  %v2997_v56 = vmul.f32 %v2028_v14, %v2892_v1  ;;  %v2032_v36 = vpop.eup %2031 }
 0x2cd   : > { %v1078_v27 = vadd.f32 1e-10, %v938_v31  ;;  %vm943_vm3 = vcmp.eq.f32.partialorder %v2785_v29, 0.0  ;;  %vm990_vm4 = vcmp.eq.f32.partialorder %v2838_v38, inf  ;;  %v3002_v40 = vadd.f32 1e-10, %v808_v19 }
 0x2ce   : > { %2043 = vrcp.f32 %v1077_v16  ;;  %v3339_v8 = vand.u32 2147483648, %v2785_v29  ;;  %v949_v14 = vsel %vm948_vm11, %v2789_v4, %v2888_v18  ;;  %v2034_v17 = vpop.eup %2033  ;;  %v3011_v3 = vmul.f32 %v2030_v58, %v2907_v54 }
 0x2cf   : > { %2045 = vrsqrt.f32 %v2983_v12  ;;  %v1116_v59 = vmul.f32 %v2032_v36, %v2640_v35  ;;  %vm997_vm5 = vcmp.eq.f32.partialorder %v2855_v30, inf  ;;  %v3016_v19 = vmul.f32 %v2034_v17, %v2924_v42 }
 0x2d0   : > { %v945_v24 = vsel %vm943_vm3, %v3339_v8, %v942_v21  ;;  %2047 = vrcp.f32 %v1078_v27  ;;  %v1056_v29 = vand.u32 2147483648, %v2983_v12  ;;  %vm950_vm6 = vcmp.eq.f32.partialorder %v2789_v4, 0.0  ;;  %v2036_v18 = vpop.eup %2035 }
 0x2d1   : > { %v1079_v16 = vadd.f32 1e-10, %v945_v24  ;;  %2049 = vrsqrt.f32 %v3002_v40  ;;  %1789 = vmatmul.mubr.f32.gmra.mrb[8].mxu1 %v1116_v59  ;;  %v3340_v58 = vand.u32 2147483648, %v2789_v4  ;;  %v956_v35 = vsel %vm955_vm12, %v2791_v26, %v2899_v55  ;;  %v2038_v31 = vpop.eup %2037 }
 0x2d2   : > { %vm957_vm7 = vcmp.eq.f32.partialorder %v2791_v26, 0.0  ;;  %v1118_v21 = vmul.f32 %v2036_v18, %v2643_v62  ;;  %v3341_v36 = vand.u32 2147483648, %v2791_v26  ;;  %v963_v4 = vsel %vm962_vm13, %v2803_v6, %v2902_v41  ;;  %v2040_v24 = vpop.eup %2039 }
 0x2d3   : > { %2051 = vrcp.f32 %v1079_v16  ;;  %v952_v10 = vsel %vm950_vm6, %v3340_v58, %v949_v14  ;;  %vm1004_vm8 = vcmp.eq.f32.partialorder %v2872_v46, inf  ;;  %v3037_v14 = vmul.f32 %v2038_v31, %v2944_v53  ;;  %v2042_v26 = vpop.eup %2041 }
 0x2d4   : > { %v1080_v27 = vadd.f32 1e-10, %v952_v10  ;;  %v959_v8 = vsel %vm957_vm7, %v3341_v36, %v956_v35  ;;  %vm964_vm9 = vcmp.eq.f32.partialorder %v2803_v6, 0.0  ;;  %v970_v62 = vsel %vm969_vm15, %v2815_v32, %v2919_v51  ;;  %1791 = vmatprep.mubr.f32.mxu1 %v1118_v21 }
 0x2d5   : > { %v1081_v55 = vadd.f32 1e-10, %v959_v8  ;;  %vm1011_vm10 = vcmp.eq.f32.partialorder %v2874_v23, inf  ;;  %v1120_v41 = vmul.f32 %v2040_v24, %v2648_v45  ;;  %v3342_v17 = vand.u32 2147483648, %v2803_v6 }
 0x2d6   : > { %2053 = vrcp.f32 %v1080_v27  ;;  %vm971_vm11 = vcmp.eq.f32.partialorder %v2815_v32, 0.0  ;;  %vm1018_vm12 = vcmp.eq.f32.partialorder %v2892_v1, inf  ;;  %v3051_v16 = vmul.f32 %v2042_v26, %v2952_v63 }
 0x2d7   : > { %v966_v59 = vsel %vm964_vm9, %v3342_v17, %v963_v4  ;;  %2055 = vrcp.f32 %v1081_v55  ;;  %v3343_v51 = vand.u32 2147483648, %v2815_v32  ;;  %vm1025_vm13 = vcmp.eq.f32.partialorder %v2907_v54, inf  ;;  %1792 = vmatmul.mubr.f32.gmra.mrb[10].mxu1 %v1120_v41 }
 0x2d8   : > { %v1082_v18 = vadd.f32 1e-10, %v966_v59  ;;  %v977_v6 = vsel %vm976_vm1, %v2824_v44, %v2929_v43  ;;  %vm978_vm14 = vcmp.eq.f32.partialorder %v2824_v44, 0.0  ;;  %v984_v10 = vsel %vm983_vm2, %v2828_v33, %v2938_v28  ;;  %v2044_v35 = vpop.eup %2043 }
 0x2d9   : > { %v973_v58 = vsel %vm971_vm11, %v3343_v51, %v970_v62  ;;  %v3344_v32 = vand.u32 2147483648, %v2824_v44  ;;  %vm985_vm15 = vcmp.eq.f32.partialorder %v2828_v33, 0.0  ;;  %v991_v21 = vsel %vm990_vm4, %v2838_v38, %v2949_v39  ;;  %v2046_v43 = vpop.eup %2045 }
 0x2da   : > { %v1083_v45 = vadd.f32 1e-10, %v973_v58  ;;  %2057 = vrcp.f32 %v1082_v18  ;;  %vm1032_vm0 = vcmp.eq.f32.partialorder %v2924_v42, inf  ;;  %v1122_v27 = vmul.f32 %v2044_v35, %v2651_v0  ;;  %v2048_v4 = vpop.eup %2047 }
 0x2db   : > { %v980_v31 = vsel %vm978_vm14, %v3344_v32, %v977_v6  ;;  %v3345_v28 = vand.u32 2147483648, %v2828_v33  ;;  %vm1039_vm1 = vcmp.eq.f32.partialorder %v2944_v53, inf  ;;  %v3078_v44 = vmul.f32 %v2046_v43, %v2983_v12  ;;  %v2050_v0 = vpop.eup %2049 }
 0x2dc   : > { %2059 = vrcp.f32 %v1083_v45  ;;  %v1084_v36 = vadd.f32 1e-10, %v980_v31  ;;  %vm992_vm2 = vcmp.eq.f32.partialorder %v2838_v38, 0.0  ;;  %v998_v39 = vsel %vm997_vm5, %v2855_v30, %v2955_v25  ;;  %1794 = vmatprep.mubr.f32.mxu1 %v1122_v27 }
 0x2dd   : > { %v987_v8 = vsel %vm985_vm15, %v3345_v28, %v984_v10  ;;  %v1124_v55 = vmul.f32 %v2048_v4, %v2656_v2  ;;  %v3346_v33 = vand.u32 2147483648, %v2838_v38  ;;  %vm999_vm3 = vcmp.eq.f32.partialorder %v2855_v30, 0.0  ;;  %v2052_v26 = vpop.eup %2051 }
 0x2de   : > { %v1085_v24 = vadd.f32 1e-10, %v987_v8  ;;  %2061 = vrcp.f32 %v1084_v36  ;;  %vm1046_vm4 = vcmp.eq.f32.partialorder %v2952_v63, inf  ;;  %v3091_v41 = vmul.f32 %v2050_v0, %v3002_v40 }
 0x2df   : > { %v994_v62 = vsel %vm992_vm2, %v3346_v33, %v991_v21  ;;  %v3347_v25 = vand.u32 2147483648, %v2855_v30  ;;  %vm1053_vm5 = vcmp.eq.f32.partialorder %v2983_v12, inf  ;;  %1795 = vmatmul.mubr.f32.gmra.mrb[12].mxu1 %v1124_v55  ;;  %v1126_v2 = vmul.f32 %v2052_v26, %v2659_v5 }
 0x2e0   : > { %2063 = vrcp.f32 %v1085_v24  ;;  %v1086_v17 = vadd.f32 1e-10, %v994_v62  ;;  %v1005_v18 = vsel %vm1004_vm8, %v2872_v46, %v2964_v50  ;;  %vm1006_vm6 = vcmp.eq.f32.partialorder %v2872_v46, 0.0  ;;  %v2054_v5 = vpop.eup %2053 }
 0x2e1   : > { %v1001_v59 = vsel %vm999_vm3, %v3347_v25, %v998_v39  ;;  %v3348_v51 = vand.u32 2147483648, %v2872_v46  ;;  %v1012_v30 = vsel %vm1011_vm10, %v2874_v23, %v2971_v22  ;;  %vm1013_vm7 = vcmp.eq.f32.partialorder %v2874_v23, 0.0  ;;  %1797 = vmatprep.mubr.f32.mxu1 %v1126_v2  ;;  %v2056_v10 = vpop.eup %2055  ;;  %v3352_v25 = vld [vmem:[#allocation14_spill] sm:$0xff] }
 0x2e2   : > { %v1087_v38 = vadd.f32 1e-10, %v1001_v59  ;;  %2065 = vrcp.f32 %v1086_v17  ;;  %v3349_v6 = vand.u32 2147483648, %v2874_v23  ;;  %v1019_v46 = vsel %vm1018_vm12, %v2892_v1, %v2997_v56 }
 0x2e3   : > { %v1008_v58 = vsel %vm1006_vm6, %v3348_v51, %v1005_v18  ;;  %v1128_v35 = vmul.f32 %v2054_v5, %v2664_v34  ;;  %vm1020_vm8 = vcmp.eq.f32.partialorder %v2892_v1, 0.0  ;;  %v1026_v22 = vsel %vm1025_vm13, %v2907_v54, %v3011_v3 }
 0x2e4   : > { %2067 = vrcp.f32 %v1087_v38  ;;  %v1088_v45 = vadd.f32 1e-10, %v1008_v58  ;;  %v1015_v50 = vsel %vm1013_vm7, %v3349_v6, %v1012_v30  ;;  %v1130_v31 = vmul.f32 %v2056_v10, %v2667_v7  ;;  %v2058_v56 = vpop.eup %2057  ;;  %v3355_v30 = vld [vmem:[#allocation17_spill] sm:$0xff] }
 0x2e5   : > { %v1089_v32 = vadd.f32 1e-10, %v1015_v50  ;;  %v1022_v23 = vsel %vm1020_vm8, %v1021_v52, %v1019_v46  ;;  %vm1027_vm9 = vcmp.eq.f32.partialorder %v2907_v54, 0.0  ;;  %1798 = vmatmul.mubr.f32.gmra.mrb[14].mxu1 %v1128_v35  ;;  %v1033_v3 = vsel %vm1032_vm0, %v2924_v42, %v3016_v19  ;;  %v3178_v50 = vld [vmem:[%s3302_s3] ss:$0 sm:$0xff] }
 0x2e6   : > { %2069 = vrcp.f32 %v1088_v45  ;;  %v1090_v34 = vadd.f32 1e-10, %v1022_v23  ;;  %v1029_v21 = vsel %vm1027_vm9, %v1028_v48, %v1026_v22  ;;  %v2060_v43 = vpop.eup %2059  ;;  %1800 = vmatprep.mubr.f32.mxu1 %v1130_v31  ;;  %v1132_v7 = vmul.f32 %v2058_v56, %v2672_v9  ;;  %v3356_v45 = vld [vmem:[#allocation18_spill] sm:$0xff] }
 0x2e7   : > { %2071 = vrcp.f32 %v1089_v32  ;;  %v1091_v1 = vadd.f32 1e-10, %v1029_v21  ;;  %vm1034_vm10 = vcmp.eq.f32.partialorder %v2924_v42, 0.0  ;;  %v1040_v52 = vsel %vm1039_vm1, %v2944_v53, %v3037_v14 }
 0x2e8   : > { %v1134_v54 = vmul.f32 %v2060_v43, %v2675_v47  ;;  %2073 = vrcp.f32 %v1090_v34  ;;  %v1036_v48 = vsel %vm1034_vm10, %v1035_v20, %v1033_v3  ;;  %vm1041_vm11 = vcmp.eq.f32.partialorder %v2944_v53, 0.0  ;;  %v2062_v19 = vpop.eup %2061 }
 0x2e9   : > { %2075 = vrcp.f32 %v1091_v1  ;;  %v1092_v27 = vadd.f32 1e-10, %v1036_v48  ;;  %v1043_v9 = vsel %vm1041_vm11, %v1042_v60, %v1040_v52  ;;  %v1047_v36 = vsel %vm1046_vm4, %v2952_v63, %v3051_v16  ;;  %1801 = vmatmul.mubr.f32.gmra.mrb[16].mxu1 %v1132_v7 }
 0x2ea   : > { %v2064_v14 = vpop.eup %2063  ;;  %v1136_v47 = vmul.f32 %v2062_v19, %v2680_v11  ;;  %v1093_v28 = vadd.f32 1e-10, %v1043_v9  ;;  %vm1048_vm12 = vcmp.eq.f32.partialorder %v2952_v63, 0.0  ;;  %v1054_v42 = vsel %vm1053_vm5, %v2983_v12, %v3078_v44  ;;  %1803 = vmatprep.mubr.f32.mxu1 %v1134_v54 }
 0x2eb   : > { %vm1060_vm13 = vcmp.eq.f32.partialorder %v3002_v40, inf  ;;  %v1138_v53 = vmul.f32 %v2064_v14, %v2683_v61  ;;  %v1050_v20 = vsel %vm1048_vm12, %v1049_v57, %v1047_v36  ;;  %vm1055_vm14 = vcmp.eq.f32.partialorder %v2983_v12, 0.0 }
 0x2ec   : > { %v2066_v60 = vpop.eup %2065  ;;  %v1063_v11 = vand.u32 2147483648, %v3002_v40  ;;  %v1057_v16 = vsel %vm1055_vm14, %v1056_v29, %v1054_v42  ;;  %v1061_v8 = vsel %vm1060_vm13, %v3002_v40, %v3091_v41  ;;  %2077 = vrcp.f32 %v1092_v27  ;;  %v3351_v41 = vld [vmem:[#allocation13_spill] sm:$0xff] }
 0x2ed   : > { %v1094_v44 = vadd.f32 1e-10, %v1050_v20  ;;  %vm1062_vm15 = vcmp.eq.f32.partialorder %v3002_v40, 0.0  ;;  %1804 = vmatmul.mubr.f32.gmra.mrb[18].mxu1 %v1136_v47  ;;  %v1140_v61 = vmul.f32 %v2066_v60, %v2688_v13  ;;  %2079 = vrcp.f32 %v1093_v28  ;;  %v3350_v13 = vld [vmem:[#allocation12_spill] sm:$0xff] }
 0x2ee   : > { %v2068_v4 = vpop.eup %2067  ;;  %v1095_v63 = vadd.f32 1e-10, %v1057_v16  ;;  %v1064_v57 = vsel %vm1062_vm15, %v1063_v11, %v1061_v8  ;;  %1806 = vmatprep.mubr.f32.mxu1 %v1138_v53 }
 0x2ef   : > { %v1142_v39 = vmul.f32 %v2068_v4, %v2691_v37  ;;  %2081 = vrcp.f32 %v1094_v44  ;;  %v1096_v29 = vadd.f32 1e-10, %v1064_v57 }
 0x2f0   : > { %v2070_v24 = vpop.eup %2069  ;;  %2083 = vrcp.f32 %v1095_v63 }
 0x2f1   : > { %v2072_v12 = vpop.eup %2071  ;;  %1807 = vmatmul.mubr.f32.gmra.mrb[20].mxu1 %v1140_v61  ;;  %v1144_v55 = vmul.f32 %v2070_v24, %v2696_v49  ;;  %2085 = vrcp.f32 %v1096_v29  ;;  %v3353_v49 = vld [vmem:[#allocation15_spill] sm:$0xff] }
 0x2f2   : > { %v2074_v0 = vpop.eup %2073  ;;  %1809 = vmatprep.mubr.f32.mxu1 %v1142_v39  ;;  %v1146_v40 = vmul.f32 %v2072_v12, %v2699_v15  ;;  %v3354_v15 = vld [vmem:[#allocation16_spill] sm:$0xff] }
 0x2f3   : > { %v2076_v33 = vpop.eup %2075  ;;  %v1148_v62 = vmul.f32 %v2074_v0, %v3350_v13 }
 0x2f4   : > { %v1150_v37 = vmul.f32 %v2076_v33, %v3351_v41 }
 0x2f5   : > { %1810 = vmatmul.mubr.f32.gmra.mrb[22].mxu1 %v1144_v55 }
 0x2f6   : > { %v2078_v26 = vpop.eup %2077  ;;  %1812 = vmatprep.mubr.f32.mxu1 %v1146_v40 }
 0x2f7   : > { %v2080_v17 = vpop.eup %2079  ;;  %v1152_v59 = vmul.f32 %v2078_v26, %v3352_v25 }
 0x2f8   : > { %v1154_v38 = vmul.f32 %v2080_v17, %v3353_v49 }
 0x2f9   : > { %1813 = vmatmul.mubr.f32.gmra.mrb[24].mxu1 %v1148_v62  ;;  %v2082_v2 = vpop.eup %2081 }
 0x2fa   : > { %1815 = vmatprep.mubr.f32.mxu1 %v1150_v37  ;;  %v2084_v18 = vpop.eup %2083  ;;  %v1156_v51 = vmul.f32 %v2082_v2, %v3354_v15 }
 0x2fb   : > { %v2086_v58 = vpop.eup %2085  ;;  %v1158_v5 = vmul.f32 %v2084_v18, %v3355_v30 }
 0x2fc   : > { %v1160_v6 = vmul.f32 %v2086_v58, %v3356_v45 }
 0x2fd   : > { %1816 = vmatmul.mubr.f32.gmra.mrb[26].mxu1 %v1152_v59 }
 0x2fe   : > { %1818 = vmatprep.mubr.f32.mxu1 %v1154_v38 }
 0x301   : > { %1819 = vmatmul.mubr.f32.gmra.mrb[28].mxu1 %v1156_v51 }
 0x302   : > { %1821 = vmatprep.mubr.f32.mxu1 %v1158_v5 }
 0x305   : > { %1822 = vmatmul.mubr.f32.gmra.mrb[30].mxu1 %v1160_v6 }
 0x381   : > { %v1778_v46 = vpop.f32.mrb[0].mxu1 }
 0x382   : > { %v1256_v10 = vadd.f32 %v1778_v46, %v3178_v50  ;;  %v1250_v35 = vpop.f32.mrb[1].mxu1 }
 0x383   : > { %v1251_v32 = vadd.f32 %v3178_v50, %v1250_v35 }
 0x384   : > { %1410 = vst [vmem:[%s3184_s11 + $0x8] sm:$0xff] %v1256_v10 }
 0x385   : > { %1409 = vst [vmem:[%s3184_s11] sm:$0xff] %v1251_v32 }
 0x38b   : > { %v1781_v22 = vpop.f32.mrb[2].mxu1 }
 0x38c   : > { %v1266_v31 = vadd.f32 %v1781_v22, %v3178_v50  ;;  %v1260_v23 = vpop.f32.mrb[3].mxu1 }
 0x38d   : > { %v1261_v56 = vadd.f32 %v3178_v50, %v1260_v23 }
 0x38e   : > { %1412 = vst [vmem:[%s3184_s11 + $0x18] sm:$0xff] %v1266_v31 }
 0x38f   : > { %1411 = vst [vmem:[%s3184_s11 + $0x10] sm:$0xff] %v1261_v56 }
 0x393   : > { %v1784_v34 = vpop.f32.mrb[4].mxu1 }
 0x394   : > { %v1276_v21 = vadd.f32 %v1784_v34, %v3178_v50  ;;  %v1270_v3 = vpop.f32.mrb[5].mxu1 }
 0x395   : > { %v1271_v43 = vadd.f32 %v3178_v50, %v1270_v3 }
 0x396   : > { %1414 = vst [vmem:[%s3184_s11 + $0x28] sm:$0xff] %v1276_v21 }
 0x397   : > { %1413 = vst [vmem:[%s3184_s11 + $0x20] sm:$0xff] %v1271_v43 }
 0x39e   : > { %v1787_v7 = vpop.f32.mrb[6].mxu1 }
 0x39f   : > { %v1286_v1 = vadd.f32 %v1787_v7, %v3178_v50  ;;  %v1280_v52 = vpop.f32.mrb[7].mxu1 }
 0x3a0   : > { %v1281_v54 = vadd.f32 %v3178_v50, %v1280_v52 }
 0x3a1   : > { %1416 = vst [vmem:[%s3184_s11 + $0x38] sm:$0xff] %v1286_v1 }
 0x3a2   : > { %1415 = vst [vmem:[%s3184_s11 + $0x30] sm:$0xff] %v1281_v54 }
 0x3a4   : > { %v1790_v48 = vpop.f32.mrb[8].mxu1 }
 0x3a5   : > { %v1296_v19 = vadd.f32 %v1790_v48, %v3178_v50  ;;  %v1290_v27 = vpop.f32.mrb[9].mxu1 }
 0x3a6   : > { %v1291_v9 = vadd.f32 %v3178_v50, %v1290_v27 }
 0x3a7   : > { %1418 = vst [vmem:[%s3184_s11 + $0x48] sm:$0xff] %v1296_v19 }
 0x3a8   : > { %1417 = vst [vmem:[%s3184_s11 + $0x40] sm:$0xff] %v1291_v9 }
 0x3aa   : > { %v1793_v36 = vpop.f32.mrb[10].mxu1 }
 0x3ab   : > { %v1306_v14 = vadd.f32 %v1793_v36, %v3178_v50  ;;  %v1300_v47 = vpop.f32.mrb[11].mxu1 }
 0x3ac   : > { %v1301_v28 = vadd.f32 %v3178_v50, %v1300_v47 }
 0x3ad   : > { %1420 = vst [vmem:[%s3184_s11 + $0x58] sm:$0xff] %v1306_v14 }
 0x3ae   : > { %1419 = vst [vmem:[%s3184_s11 + $0x50] sm:$0xff] %v1301_v28 }
 0x3b2   : > { %v1796_v42 = vpop.f32.mrb[12].mxu1 }
 0x3b3   : > { %v1316_v53 = vadd.f32 %v1796_v42, %v3178_v50  ;;  %v1310_v20 = vpop.f32.mrb[13].mxu1 }
 0x3b4   : > { %v1311_v60 = vadd.f32 %v3178_v50, %v1310_v20 }
 0x3b5   : > { %1422 = vst [vmem:[%s3184_s11 + $0x68] sm:$0xff] %v1316_v53 }
 0x3b6   : > { %1421 = vst [vmem:[%s3184_s11 + $0x60] sm:$0xff] %v1311_v60 }
 0x3b8   : > { %v1799_v11 = vpop.f32.mrb[14].mxu1 }
 0x3b9   : > { %v1326_v16 = vadd.f32 %v1799_v11, %v3178_v50  ;;  %v1320_v8 = vpop.f32.mrb[15].mxu1 }
 0x3ba   : > { %v1321_v4 = vadd.f32 %v3178_v50, %v1320_v8 }
 0x3bb   : > { %1424 = vst [vmem:[%s3184_s11 + $0x78] sm:$0xff] %v1326_v16 }
 0x3bc   : > { %1423 = vst [vmem:[%s3184_s11 + $0x70] sm:$0xff] %v1321_v4  ;;  %v1802_v44 = vpop.f32.mrb[16].mxu1 }
 0x3bd   : > { %v1336_v61 = vadd.f32 %v1802_v44, %v3178_v50  ;;  %v1330_v63 = vpop.f32.mrb[17].mxu1 }
 0x3be   : > { %v1331_v57 = vadd.f32 %v3178_v50, %v1330_v63 }
 0x3bf   : > { %1426 = vst [vmem:[%s3184_s11 + $0x88] sm:$0xff] %v1336_v61 }
 0x3c0   : > { %1425 = vst [vmem:[%s3184_s11 + $0x80] sm:$0xff] %v1331_v57  ;;  %v1805_v24 = vpop.f32.mrb[18].mxu1 }
 0x3c1   : > { %v1346_v39 = vadd.f32 %v1805_v24, %v3178_v50  ;;  %v1340_v12 = vpop.f32.mrb[19].mxu1 }
 0x3c2   : > { %v1341_v29 = vadd.f32 %v3178_v50, %v1340_v12 }
 0x3c3   : > { %1428 = vst [vmem:[%s3184_s11 + $0x98] sm:$0xff] %v1346_v39 }
 0x3c4   : > { %1427 = vst [vmem:[%s3184_s11 + $0x90] sm:$0xff] %v1341_v29  ;;  %v1808_v0 = vpop.f32.mrb[20].mxu1 }
 0x3c5   : > { %v1356_v55 = vadd.f32 %v1808_v0, %v3178_v50  ;;  %v1350_v33 = vpop.f32.mrb[21].mxu1 }
 0x3c6   : > { %v1351_v40 = vadd.f32 %v3178_v50, %v1350_v33 }
 0x3c7   : > { %1430 = vst [vmem:[%s3184_s11 + $0xa8] sm:$0xff] %v1356_v55 }
 0x3c8   : > { %1429 = vst [vmem:[%s3184_s11 + $0xa0] sm:$0xff] %v1351_v40  ;;  %v1811_v13 = vpop.f32.mrb[22].mxu1 }
 0x3c9   : > { %v1366_v62 = vadd.f32 %v1811_v13, %v3178_v50  ;;  %v1360_v26 = vpop.f32.mrb[23].mxu1 }
 0x3ca   : > { %v1361_v41 = vadd.f32 %v3178_v50, %v1360_v26 }
 0x3cb   : > { %1432 = vst [vmem:[%s3184_s11 + $0xb8] sm:$0xff] %v1366_v62 }
 0x3cc   : > { %1431 = vst [vmem:[%s3184_s11 + $0xb0] sm:$0xff] %v1361_v41  ;;  %v1814_v37 = vpop.f32.mrb[24].mxu1 }
 0x3cd   : > { %v1376_v17 = vadd.f32 %v1814_v37, %v3178_v50  ;;  %v1370_v25 = vpop.f32.mrb[25].mxu1 }
 0x3ce   : > { %v1371_v59 = vadd.f32 %v3178_v50, %v1370_v25 }
 0x3cf   : > { %1434 = vst [vmem:[%s3184_s11 + $0xc8] sm:$0xff] %v1376_v17 }
 0x3d0   : > { %1433 = vst [vmem:[%s3184_s11 + $0xc0] sm:$0xff] %v1371_v59  ;;  %v1817_v2 = vpop.f32.mrb[26].mxu1 }
 0x3d1   : > { %v1386_v49 = vadd.f32 %v1817_v2, %v3178_v50  ;;  %v1380_v38 = vpop.f32.mrb[27].mxu1 }
 0x3d2   : > { %v1381_v18 = vadd.f32 %v3178_v50, %v1380_v38 }
 0x3d3   : > { %1436 = vst [vmem:[%s3184_s11 + $0xd8] sm:$0xff] %v1386_v49 }
 0x3d4   : > { %1435 = vst [vmem:[%s3184_s11 + $0xd0] sm:$0xff] %v1381_v18  ;;  %v1820_v15 = vpop.f32.mrb[28].mxu1 }
 0x3d5   : > { %v1396_v51 = vadd.f32 %v1820_v15, %v3178_v50  ;;  %v1390_v58 = vpop.f32.mrb[29].mxu1 }
 0x3d6   : > { %v1391_v30 = vadd.f32 %v3178_v50, %v1390_v58 }
 0x3d7   : > { %1438 = vst [vmem:[%s3184_s11 + $0xe8] sm:$0xff] %v1396_v51 }
 0x3d8   : > { %1437 = vst [vmem:[%s3184_s11 + $0xe0] sm:$0xff] %v1391_v30  ;;  %v1823_v5 = vpop.f32.mrb[30].mxu1 }
 0x3d9   : > { %v1406_v45 = vadd.f32 %v1823_v5, %v3178_v50  ;;  %v1400_v6 = vpop.f32.mrb[31].mxu1 }
 0x3da   : > { %v1401_v46 = vadd.f32 %v3178_v50, %v1400_v6 }
 0x3db   : > { %1440 = vst [vmem:[%s3184_s11 + $0xf8] sm:$0xff] %v1406_v45 }
 0x3dc   : > { %1439 = vst [vmem:[%s3184_s11 + $0xf0] sm:$0xff] %v1401_v46 }
 0x3dd   : > { %2186 = shalt.err (!%p2183_p1)
}
 0x3de   : > { %s2187_s9 = scalar_lea.hbm %s3250_s28, 4096  ;;  %s2191_s25 = scalar_lea.hbm %s3303_s4, 8192 }
 0x3df   : > { %p2188_p13 = scmp.ne.s32.totalorder %s3250_s28, %s2187_s9  ;;  %p2192_p4 = scmp.lt.u32.totalorder %s3250_s28, %s3303_s4 }
 0x3e0   : > { %p2193_p5 = scmp.lt.u32.totalorder %s2191_s25, %s2187_s9  ;;  %p2195_p11 = scmp.lt.u32.totalorder %s2187_s9, %s3250_s28 }
 0x3e1   : > { %p2189_p6 = pnand %p2188_p13, %p3357_p0 }
 0x3e2   : > { %p2194_p8 = por %p2193_p5, %p2192_p4 }
 0x3e3   : > { %p2190_p10 = pneg %p2189_p6 }
 0x3e4   : > { %p2196_p2 = por %p2195_p11, %p2194_p8 }
 0x3e6   : > { %p2197_p3 = pnand %p2196_p2, %p2190_p10 }
 0x3e8   : > { %2200 = shalt.err (!%p2197_p3)
}
 0x3e9   : > { %s2251_s11 = smov 128   ;;  %s2252_s12 = smov 8  }
 0x3ea   : > { %1898 = dma.vmem_to_hbm [thread:$0]  (%p3357_p0), %s3252_s30, 4096, %s3250_s28, %s1442_s19, %s2251_s11, %s2251_s11, %s2252_s12  }
 0x3eb PF: > { %s1470_s6 = sand.u32 1, %s2231_s15   ;;  %p3358_p7 = scmp.ne.s32.totalorder %s3315_s22, 0 }
 0x3ec   : > { %p3359_p9 = scmp.ge.s32.totalorder %s2243_s18, 2  ;;  %s1471_s7 = scalar_lea.sflag [#allocation4], %s1470_s6 }
 0x3ee   : > { %p1912_p12 = pnand %p3359_p9, %p3358_p7 }
 0x3f0   : > { %2226 = dma.done.wait (!%p1912_p12), %s1471_s7, 4096  }
 0x3f1   : > { %2228 = vsyncadd (!%p1912_p12), %s1471_s7, 4294963200  ;;  %p18_p1 = scmp.ge.s32.totalorder %s2394_s26, 4   ;;  %s3360_s15 = smov %s2235_s16 }
 0x3f2   : > { %s3361_s16 = smov %s2239_s17  ;;  %s3362_s17 = smov %s2410_s14 }
 0x3f3   : > { %s3363_s18 = smov %s2394_s26  ;;  %20 = sbr.rel (!%p18_p1) target bundleno = 6 (0x6), region = 89 }
 0x3fa   :  { %1476 = vsyncpa [#allocation3], 1 }
 0x3fb   :  { %1478 = vsyncpa [#allocation3 + $0x1], 1 }
 0x3fc   :  { %1479 = vsyncpa [#allocation6], 1 }
 0x3fd   :  { %1480 = vsyncpa [#allocation4], 1 }
 0x3fe   :  { %1482 = vsyncpa [#allocation4 + $0x1], 1 }

</bundles_post_ra>
